<compile_context>
chip_gen: v5e
topology: v5e:2x2
jax: 0.10.0
libtpu: 0.0.40
codegen_flags: <defaults>
</compile_context>

<pallas_src>
import jax
import jax.numpy as jnp
from jax.experimental import pallas as pl
from jax.experimental.pallas import tpu as pltpu


def _round_up(a, b):
    return -(-a // b) * b


def _cdiv(a, b):
    return -(-a // b)


# --------------------------------------------------------------------------- #
# Kernel
# --------------------------------------------------------------------------- #
def _gemv_sigmoid_kernel(x_ref, w_ref, b_ref, out_ref, acc_ref):
    """out = sigmoid(x @ W_total + b_total), K streamed, f32 accumulation.

    grid = (batch_tiles, k_tiles)
      x_ref : (tb, tk) f32      batch- and K-tiled input
      w_ref : (1, tk)  f32      K tile of the collapsed weight row
      b_ref : (1, 1)   f32      collapsed bias
      out_ref: (tb, 1) f32      written once, in the last-K epilogue
      acc_ref: (tb, 1) f32      VMEM accumulator scratch
    """
    k = pl.program_id(1)
    nk = pl.num_programs(1)

    @pl.when(k == 0)
    def _():
        acc_ref[...] = jnp.zeros_like(acc_ref)

    # Partial GEMV for this K tile: VPU multiply + cross-lane reduction.
    # (Width-1 output -> VPU/XLU path instead of an under-filled N=1 MXU op.)
    acc_ref[...] += jnp.sum(x_ref[...] * w_ref[...], axis=-1, keepdims=True)

    @pl.when(k == nk - 1)
    def _():
        logits = acc_ref[...] + b_ref[...]
        out_ref[...] = jax.nn.sigmoid(logits).astype(out_ref.dtype)


# --------------------------------------------------------------------------- #
# Parameter folding (do once per model; cache for repeated forward calls)
# --------------------------------------------------------------------------- #
def fold_params(weights, biases):
    """Collapse the purely-linear MLP into (W_total, b_total).

    Exact (up to fp reassociation) because BowModel has no inter-layer
    nonlinearity and Dropout is identity in eval mode.
    weights[j]: (in_j, out_j), biases[j]: (1, out_j); last out dim is 1.
    """
    w_total = weights[0].astype(jnp.float32)          # (input_dim, h0)
    b_total = biases[0].astype(jnp.float32)           # (1, h0)
    for w, b in zip(weights[1:], biases[1:]):
        w = w.astype(jnp.float32)
        b = b.astype(jnp.float32)
        w_total = w_total @ w                         # (input_dim, out_j)
        b_total = b_total @ w + b                     # (1, out_j)
    return w_total, b_total                           # (input_dim, 1), (1, 1)


# --------------------------------------------------------------------------- #
# Wrapper
# --------------------------------------------------------------------------- #
def _choose_tiles(batch, input_dim, tb_target, tk_target):
    nb = max(1, _cdiv(batch, tb_target))
    # Give v7x's two TensorCores balanced batch tiles; near-free on v5e/v6e.
    if nb == 1 and batch >= 128:
        nb = 2
    if nb > 1 and nb % 2:
        nb += 1
    tb = _round_up(_cdiv(batch, nb), 8)
    nk = max(1, _cdiv(input_dim, tk_target))
    tk = _round_up(_cdiv(input_dim, nk), 128)
    return tb, nb, tk, nk


def bow_forward_folded(x, w_total, b_total, *, tb_target=512, tk_target=2048):
    """Fused forward with pre-folded params.

    x:       (batch, input_dim) float32
    w_total: (input_dim, 1) float32   (from fold_params)
    b_total: (1, 1) float32           (from fold_params)
    returns: (batch, 1) float32 in (0, 1)
    """
    batch, input_dim = x.shape
    assert w_total.shape == (input_dim, 1)

    tb, nb, tk, nk = _choose_tiles(batch, input_dim, tb_target, tk_target)
    pad_b, pad_k = nb * tb, nk * tk

    # x stays f32 (no bf16 copy materialised in HBM); zero-pad only if the
    # tile grid over-covers it. Padded rows/cols contribute 0 to the GEMV.
    x_p = x.astype(jnp.float32)
    if (pad_b, pad_k) != (batch, input_dim):
        x_p = jnp.pad(x_p, ((0, pad_b - batch), (0, pad_k - input_dim)))

    w_row = w_total.reshape(1, input_dim).astype(jnp.float32)
    if pad_k != input_dim:
        w_row = jnp.pad(w_row, ((0, 0), (0, pad_k - input_dim)))
    b = jnp.asarray(b_total, jnp.float32).reshape(1, 1)

    # VMEM budget: double-buffered x tile dominates; cap well under v7x 64 MiB.
    vmem_est = 2 * tb * tk * 4 + 2 * tk * 4 + 3 * tb * 128 * 4 + 4096
    vmem_limit = int(min(max(2 * vmem_est, 8 * 2**20), 40 * 2**20))

    flops = 2 * pad_b * pad_k                     # GEMV
    bytes_accessed = (
        pad_b * pad_k * 4                         # x, streamed once
        + nb * pad_k * 4                          # W_total row, per batch tile
        + pad_b * 4 + 4                           # output + bias
    )

    out = pl.pallas_call(
        _gemv_sigmoid_kernel,
        out_shape=jax.ShapeDtypeStruct((pad_b, 1), jnp.float32),
        grid_spec=pltpu.PrefetchScalarGridSpec(
            num_scalar_prefetch=0,
            grid=(nb, nk),
            in_specs=[
                pl.BlockSpec((tb, tk), lambda i, k: (i, k)),   # x tile
                pl.BlockSpec((1, tk), lambda i, k: (0, k)),    # W_total K tile
                pl.BlockSpec((1, 1), lambda i, k: (0, 0)),     # b_total
            ],
            out_specs=pl.BlockSpec((tb, 1), lambda i, k: (i, 0)),
            scratch_shapes=[pltpu.VMEM((tb, 1), jnp.float32)],
        ),
        compiler_params=pltpu.CompilerParams(
            dimension_semantics=("parallel", "arbitrary"),
            vmem_limit_bytes=vmem_limit,
        ),
        cost_estimate=pl.CostEstimate(
            flops=flops, transcendentals=pad_b, bytes_accessed=bytes_accessed
        ),
    )(x_p, w_row, b)

    return out[:batch]


def bow_forward(x, weights, biases, **kw):
    """Convenience wrapper: fold + forward. For repeated calls, call
    fold_params once and reuse the folded params with bow_forward_folded."""
    w_total, b_total = fold_params(weights, biases)
    return bow_forward_folded(x, w_total, b_total, **kw)


# --------------------------------------------------------------------------- #
# Reference / test
# --------------------------------------------------------------------------- #
def init_params(key, input_dim, hidden_dim):
    """Deterministic parameter init mirroring the module's layer shapes."""
    dims = [input_dim] + list(hidden_dim) + [1]
    weights, biases = [], []
    for i in range(len(dims) - 1):
        key, wk, bk = jax.random.split(key, 3)
        bound = 1.0 / jnp.sqrt(dims[i])
        weights.append(jax.random.uniform(
            wk, (dims[i], dims[i + 1]), jnp.float32, minval=-bound, maxval=bound))
        biases.append(jax.random.uniform(
            bk, (1, dims[i + 1]), jnp.float32, minval=-bound, maxval=bound))
    return weights, biases


def reference_forward(x, weights, biases):
    """Plain-JAX layered f32 reference (eval-mode dropout = identity)."""
    h = x
    for w, b in zip(weights, biases):
        h = h @ w + b
    return jax.nn.sigmoid(h)


def _run_case(key, batch, input_dim, hidden_dim, atol, **fwd_kw):
    key, xk, pk = jax.random.split(key, 3)
    x = jax.random.normal(xk, (batch, input_dim), dtype=jnp.float32)
    weights, biases = init_params(pk, input_dim, hidden_dim)

    # Fold once (cacheable per model), then run the kernel.
    w_total, b_total = fold_params(weights, biases)
    out = bow_forward_folded(x, w_total, b_total, **fwd_kw)
    out = jax.block_until_ready(out)

    ref = reference_forward(x, weights, biases)

    assert out.shape == (batch, 1), out.shape
    assert bool(jnp.all(jnp.isfinite(out)))
    assert jnp.allclose(out, ref, atol=atol, rtol=atol), (
        float(jnp.max(jnp.abs(out - ref)))
    )
    return key


if __name__ == "__main__":
    key = jax.random.PRNGKey(0)

    # Case 1: default tiles — 2 balanced batch tiles (tb=152), single K tile.
    key = _run_case(key, batch=300, input_dim=1000, hidden_dim=[256, 128],
                    atol=5e-4)

    # Case 2: forced K streaming / accumulation path (grid = (4, 4)).
    key = _run_case(key, batch=300, input_dim=1000, hidden_dim=[256, 128],
                    atol=5e-4, tb_target=128, tk_target=256)

    # Case 3: tiny shapes (whole-array blocks, grid = (1, 1)).
    key = _run_case(key, batch=8, input_dim=64, hidden_dim=[32, 16], atol=5e-4)

    print("KERNEL_OK")
</pallas_src>

<mosaic_0001>
module attributes {stable_mosaic.version = 11 : i64} {
  func.func @_gemv_sigmoid_kernel(%arg0: i32, %arg1: i32, %arg2: memref<152x1024xf32, #tpu.memory_space<vmem>>, %arg3: memref<1x1024xf32, #tpu.memory_space<vmem>>, %arg4: memref<1x1xf32, #tpu.memory_space<vmem>>, %arg5: memref<152x1xf32, #tpu.memory_space<vmem>>, %arg6: memref<152x1xf32, #tpu.memory_space<vmem>>) attributes {dimension_semantics = [#tpu.dimension_semantics<parallel>, #tpu.dimension_semantics<arbitrary>], iteration_bounds = array<i64: 2, 1>, scalar_prefetch = 0 : i64, scratch_operands = 1 : i64, tpu.core_type = #tpu.core_type<tc>, window_params = [{transform_indices = @transform_0, window_bounds = array<i64: 152, 1024>}, {transform_indices = @transform_1, window_bounds = array<i64: 1, 1024>}, {pipeline_mode = #tpu.pipeline_mode<synchronous>, transform_indices = @transform_2, window_bounds = array<i64: 1, 1>}, {transform_indices = @transform_3, window_bounds = array<i64: 152, 1>}]} {
    %c0_i32 = arith.constant 0 : i32
    %0 = arith.cmpi eq, %arg1, %c0_i32 : i32
    %1 = arith.extui %0 : i1 to i32
    %c0_i32_0 = arith.constant 0 : i32
    %2 = arith.cmpi ne, %1, %c0_i32_0 : i32
    scf.if %2 {
      %cst_10 = arith.constant 0.000000e+00 : f32
      %15 = vector.broadcast %cst_10 : f32 to vector<152x1xf32>
      %c0_11 = arith.constant 0 : index
      %c0_12 = arith.constant 0 : index
      %16 = vector.load %arg6[%c0_11, %c0_12] : memref<152x1xf32, #tpu.memory_space<vmem>>, vector<152x1xf32>
      tpu.vector_store %arg6[%c0_11, %c0_12], %15 {strides = array<i32>} : memref<152x1xf32, #tpu.memory_space<vmem>>, vector<152x1xf32>,
    } else {
    }
    %c0 = arith.constant 0 : index
    %c0_1 = arith.constant 0 : index
    %3 = vector.load %arg6[%c0, %c0_1] : memref<152x1xf32, #tpu.memory_space<vmem>>, vector<152x1xf32>
    %c0_2 = arith.constant 0 : index
    %c0_3 = arith.constant 0 : index
    %4 = vector.load %arg2[%c0_2, %c0_3] : memref<152x1024xf32, #tpu.memory_space<vmem>>, vector<152x1024xf32>
    %c0_4 = arith.constant 0 : index
    %c0_5 = arith.constant 0 : index
    %5 = vector.load %arg3[%c0_4, %c0_5] : memref<1x1024xf32, #tpu.memory_space<vmem>>, vector<1x1024xf32>
    %6 = vector.broadcast %5 : vector<1x1024xf32> to vector<152x1024xf32>
    %7 = arith.mulf %4, %6 : vector<152x1024xf32>
    %cst = arith.constant dense<0.000000e+00> : vector<152xf32>
    %8 = vector.multi_reduction <add>, %7, %cst [1] : vector<152x1024xf32> to vector<152xf32>
    %9 = vector.shape_cast %8 : vector<152xf32> to vector<152x1xf32>
    %10 = arith.addf %3, %9 : vector<152x1xf32>
    %c0_6 = arith.constant 0 : index
    %c0_7 = arith.constant 0 : index
    %11 = vector.load %arg6[%c0_6, %c0_7] : memref<152x1xf32, #tpu.memory_space<vmem>>, vector<152x1xf32>
    tpu.vector_store %arg6[%c0_6, %c0_7], %10 {strides = array<i32>} : memref<152x1xf32, #tpu.memory_space<vmem>>, vector<152x1xf32>,
    %c0_i32_8 = arith.constant 0 : i32
    %12 = arith.cmpi eq, %arg1, %c0_i32_8 : i32
    %13 = arith.extui %12 : i1 to i32
    %c0_i32_9 = arith.constant 0 : i32
    %14 = arith.cmpi ne, %13, %c0_i32_9 : i32
    scf.if %14 {
      %c0_10 = arith.constant 0 : index
      %c0_11 = arith.constant 0 : index
      %15 = vector.load %arg6[%c0_10, %c0_11] : memref<152x1xf32, #tpu.memory_space<vmem>>, vector<152x1xf32>
      %c0_12 = arith.constant 0 : index
      %c0_13 = arith.constant 0 : index
      %16 = vector.load %arg4[%c0_12, %c0_13] : memref<1x1xf32, #tpu.memory_space<vmem>>, vector<1x1xf32>
      %17 = vector.broadcast %16 : vector<1x1xf32> to vector<152x1xf32>
      %18 = arith.addf %15, %17 : vector<152x1xf32>
      %19 = arith.negf %18 : vector<152x1xf32>
      %20 = math.exp %19 : vector<152x1xf32>
      %cst_14 = arith.constant 1.000000e+00 : f32
      %21 = vector.broadcast %cst_14 : f32 to vector<152x1xf32>
      %22 = arith.addf %21, %20 : vector<152x1xf32>
      %23 = arith.divf %21, %22 : vector<152x1xf32>
      %c0_15 = arith.constant 0 : index
      %c0_16 = arith.constant 0 : index
      %24 = vector.load %arg5[%c0_15, %c0_16] : memref<152x1xf32, #tpu.memory_space<vmem>>, vector<152x1xf32>
      tpu.vector_store %arg5[%c0_15, %c0_16], %23 {strides = array<i32>} : memref<152x1xf32, #tpu.memory_space<vmem>>, vector<152x1xf32>,
    } else {
    }
    return
  }
  func.func @transform_0(%arg0: i32, %arg1: i32) -> (i32, i32) {
    %c0_i32 = arith.constant 0 : i32
    return %arg0, %arg1 : i32, i32
  }
  func.func @transform_1(%arg0: i32, %arg1: i32) -> (i32, i32) {
    %c0_i32 = arith.constant 0 : i32
    %c0_i32_0 = arith.constant 0 : i32
    return %c0_i32, %arg1 : i32, i32
  }
  func.func @transform_2(%arg0: i32, %arg1: i32) -> (i32, i32) {
    %c0_i32 = arith.constant 0 : i32
    %c0_i32_0 = arith.constant 0 : i32
    %c0_i32_1 = arith.constant 0 : i32
    return %c0_i32, %c0_i32_0 : i32, i32
  }
  func.func @transform_3(%arg0: i32, %arg1: i32) -> (i32, i32) {
    %c0_i32 = arith.constant 0 : i32
    %c0_i32_0 = arith.constant 0 : i32
    return %arg0, %c0_i32 : i32, i32
  }
}

</mosaic_0001>

<bundles_post_ra>
// kernel: tpu_custom_call.1
= control target key start
LH: loop header
LB: loop body
LE: loop exit
PB: predicated region body
PF: predicated region fallthrough
CT: control target
= control target key end

     0   :  { %s2464_s0 = inlined_call_operand.hbm [shape: f32[304,1024], index: 0, kind: input, shape index: {}]   ;;  %s2465_s1 = inlined_call_operand.hbm [shape: f32[1,1024], index: 1, kind: input, shape index: {}]   ;;  %s2466_s2 = inlined_call_operand.<no memory space> [shape: f32[1,1], index: 2, kind: input, shape index: {}]   ;;  %s2467_s3 = inlined_call_operand.vmem [shape: f32[304,1], index: 3, kind: output, shape index: {}]  }
   0x1   :  { %v8_v0 = vstv %s2466_s2 }
   0x2   :  { %9 = vst [vmem:[#allocation3] sm:$0x1] %v8_v0 }
   0x3   :  { %10 = vsyncpa [#allocation5], 0 }
   0x4   :  { %12 = vsyncpa [#allocation5 + $0x1], 0 }
   0x5   :  { %13 = vsyncpa [#allocation7], 0  ;;  %s1654_s14 = smov 0   ;;  %s1656_s15 = smov 0  }
   0x6   :  { %s1658_s16 = smov 0   ;;  %s1660_s17 = smov 0  }
   0x7   :  { %s1662_s18 = smov 0   ;;  %s1664_s19 = smov 0  }
   0x8 LB: > { %s1329_s2 = sadd.s32 4294967295, %s1625_s19   ;;  %s40_s20 = sadd.s32 1, %s1613_s16  ;;  %s1625_s19 = sphi %s1664_s19, %s19_s19   ;;  %s1621_s18 = sphi %s1662_s18, %s2502_s18   ;;  %s1617_s17 = sphi %s1660_s17, %s2501_s17   ;;  %s1613_s16 = sphi %s1658_s16, %s2500_s16   ;;  %s1609_s15 = sphi %s1656_s15, %s2499_s15   ;;  %s1605_s14 = sphi %s1654_s14, %s2498_s14  }
   0x9   : > { %p47_p0 = scmp.ne.s32.totalorder %s1613_s16, %s1609_s15  ;;  %p48_p1 = scmp.eq.s32.totalorder %s1625_s19, 0 }
   0xa   : > { %p53_p2 = scmp.ne.s32.totalorder %s1609_s15, %s1605_s14  ;;  %p1688_p3 = scmp.eq.s32.totalorder %s1329_s2, 0 }
   0xb   : > { %p1692_p4 = por %p48_p1, %p47_p0  ;;  %p1331_p5 = scmp.ge.s32.totalorder %s1625_s19, 1 }
   0xc   : > { %p1699_p6 = por %p1688_p3, %p53_p2  ;;  %p137_p7 = scmp.lt.s32.totalorder %s1625_s19, 3 }
   0xd   : > { %s151_s26 = sshll.u32 %s2465_s1, 4  ;;  %s1627_s28 = smov [#allocation6]   ;;  %s152_s26 = int_to_ptr.hbm [resolvable:$true] %s151_s26 }
   0xe   : > { %p1707_p8 = pnand %p1331_p5, %p137_p7  ;;  %s153_s29 = sshll.u32 %s1627_s28, 4  ;;  %s154_s29 = int_to_ptr.vmem [resolvable:$true] %s153_s29 }
   0xf   : > { %p1380_p10 = scmp.lt.s32.totalorder %s1625_s19, 2  ;;  %s31_s4 = sadd.s32 1, %s1621_s18 }
  0x10   : > { %p1371_p9 = pneg %p1707_p8  ;;  %p33_p13 = scmp.ge.s32.totalorder %s31_s4, 2 }
  0x11   : > { %p1718_p12 = pnand %p1380_p10, %p1692_p4  ;;  %s167_s5 = sand.u32 1, %s1613_s16  }
  0x12   : > { %p1372_p11 = pnand %p1371_p9, %p1688_p3  ;;  %s1362_s6 = smul.u32 1216, %s1621_s18 }
  0x13   : > { %s2504_s4 = smov (%p33_p13, %s31_s4), 0  ;;  %s1363_s7 = smul.u32 1216, %s167_s5 }
  0x14   : > { %1374 = dma.hbm_to_vmem [thread:$0]  (!%p1372_p11), %s152_s26, 128, %s154_s29, [#allocation7]  }
  0x15   : > { %s35_s8 = ssub.s32 %s1621_s18, %s2504_s4  ;;  %s179_s11 = scalar_lea.hbm %s2464_s0, %s1362_s6 }
  0x16   : > { %p38_p0 = scmp.eq.s32.totalorder %s35_s8, 0  ;;  %s180_s12 = sshll.u32 %s179_s11, 4  ;;  %s181_s12 = int_to_ptr.hbm [resolvable:$true] %s180_s12 }
  0x17   : > { %s171_s13 = scalar_lea.vmem [#allocation4], %s1363_s7  ;;  %s168_s22 = scalar_lea.sflag [#allocation5], %s167_s5 }
  0x18   : > { %s182_s14 = sshll.u32 %s171_s13, 4  ;;  %s1628_s24 = smov 1024   ;;  %s183_s14 = int_to_ptr.vmem [resolvable:$true] %s182_s14 }
  0x19   : > { %s1735_s2 = scalar_select %p38_p0, %s1613_s16, %s40_s20  }
  0x1a   : > { %s1629_s25 = smov 64   ;;  %194 = sbr.rel (%p1707_p8) target bundleno = 290 (0x122), region = 32 }
  0x1b   : > { %1378 = dma.hbm_to_vmem [thread:$0]  (!%p1718_p12), %s181_s12, 19456, %s183_s14, %s168_s22, %s1628_s24, %s1628_s24, %s1629_s25  }
  0x1c   : > { %s196_s26 = sand.u32 (!%p1707_p8), 1, %s1609_s15  }
  0x1d   : > { %s1364_s28 = smul.u32 (!%p1707_p8), 1216, %s196_s26  ;;  %s197_s29 = scalar_lea.sflag (!%p1707_p8), [#allocation5], %s196_s26 }
  0x1f   : > { %s1742_s6 = scalar_lea.vmem [#allocation4], %s1364_s28 }
  0x20   : > { %1596 = dma.done.wait (%p1699_p6), %s197_s29, 19456  }
  0x21   : > { %1598 = vsyncadd (%p1699_p6), %s197_s29, 4294947840 }
  0x22   : > { %1600 = dma.done.wait (%p1688_p3), [#allocation7], 128  }
  0x23   : > { %1602 = vsyncadd (%p1688_p3), [#allocation7], 4294967168  ;;  %v313_v1 = vld [vmem:[%s1742_s6 + $0x100] sm:$0xff]  ;;  %v314_v2 = vld [vmem:[%s1742_s6 + $0x108] sm:$0xff]  ;;  %vm242_vm0 = vcmask 7168   ;;  %s232_s20 = smul.u32 19, %s1617_s17 }
  0x24   : > { %v315_v3 = vld [vmem:[%s1742_s6 + $0x110] sm:$0xff]  ;;  %v433_v4 = vld [vmem:[#allocation6] sm:$0xff]  ;;  %v316_v5 = vld [vmem:[%s1742_s6 + $0x118] sm:$0xff] }
  0x25   : > { %v1756_v6 = vperm.slane %v433_v4, 0  ;;  %v1758_v7 = vperm.slane %v433_v4, 1  ;;  %v1760_v8 = vperm.slane %v433_v4, 2  ;;  %v1762_v9 = vperm.slane %v433_v4, 3  ;;  %v297_v13 = vld [vmem:[%s1742_s6 + $0x80] sm:$0xff]  ;;  %v298_v14 = vld [vmem:[%s1742_s6 + $0x88] sm:$0xff] }
  0x26   : > { %v1764_v10 = vperm.slane %v433_v4, 4  ;;  %v1766_v11 = vperm.slane %v433_v4, 5  ;;  %v1768_v12 = vperm.slane %v433_v4, 6  ;;  %v299_v15 = vld [vmem:[%s1742_s6 + $0x90] sm:$0xff]  ;;  %v317_v16 = vld [vmem:[%s1742_s6 + $0x120] sm:$0xff]  ;;  %v318_v17 = vld [vmem:[%s1742_s6 + $0x128] sm:$0xff] }
  0x27   : > { %v319_v18 = vld [vmem:[%s1742_s6 + $0x130] sm:$0xff]  ;;  %v483_v19 = vmul.f32 %v1756_v6, %v313_v1  ;;  %v484_v20 = vmul.f32 %v1758_v7, %v314_v2  ;;  %v485_v21 = vmul.f32 %v1760_v8, %v315_v3  ;;  %v320_v22 = vld [vmem:[%s1742_s6 + $0x138] sm:$0xff]  ;;  %v1780_v23 = vperm.slane %v433_v4, 7  ;;  %v281_v26 = vld [vmem:[%s1742_s6] sm:$0xff]  ;;  %p2111_p1 = scmp.lt.s32.totalorder %s232_s20, 37 }
  0x28   : > { %v486_v24 = vmul.f32 %v1762_v9, %v316_v5  ;;  %v300_v25 = vld [vmem:[%s1742_s6 + $0x98] sm:$0xff]  ;;  %v301_v28 = vld [vmem:[%s1742_s6 + $0xa0] sm:$0xff]  ;;  %v467_v29 = vmul.f32 %v1756_v6, %v297_v13  ;;  %v468_v30 = vmul.f32 %v1758_v7, %v298_v14  ;;  %v469_v31 = vmul.f32 %v1760_v8, %v299_v15  ;;  %v282_v32 = vld [vmem:[%s1742_s6 + $0x8] sm:$0xff] }
  0x29   : > { %v639_v27 = vadd.f32 %v484_v20, %v483_v19  ;;  %v283_v33 = vld [vmem:[%s1742_s6 + $0x10] sm:$0xff]  ;;  %v487_v34 = vmul.f32 %v1764_v10, %v317_v16  ;;  %v488_v35 = vmul.f32 %v1766_v11, %v318_v17  ;;  %v489_v36 = vmul.f32 %v1768_v12, %v319_v18  ;;  %v302_v37 = vld [vmem:[%s1742_s6 + $0xa8] sm:$0xff]  ;;  %v284_v42 = vld [vmem:[%s1742_s6 + $0x18] sm:$0xff]  ;;  %s2506_s20 = smov (!%p2111_p1, %s232_s20), 37 }
  0x2a   : > { %v303_v38 = vld [vmem:[%s1742_s6 + $0xb0] sm:$0xff]  ;;  %v470_v40 = vmul.f32 %v1762_v9, %v300_v25  ;;  %v621_v41 = vadd.f32 %v468_v30, %v467_v29  ;;  %v451_v43 = vmul.f32 %v1756_v6, %v281_v26  ;;  %v321_v44 = vld [vmem:[%s1742_s6 + $0x140] sm:$0xff]  ;;  %v322_v45 = vld [vmem:[%s1742_s6 + $0x148] sm:$0xff]  ;;  %v490_v46 = vmul.f32 %v1780_v23, %v320_v22  ;;  %s1338_s17 = sshll.u32 %s2506_s20, 3 }
  0x2b   : > { %v640_v39 = vadd.f32 %v639_v27, %v485_v21  ;;  %v304_v47 = vld [vmem:[%s1742_s6 + $0xb8] sm:$0xff]  ;;  %v471_v48 = vmul.f32 %v1764_v10, %v301_v28  ;;  %v452_v49 = vmul.f32 %v1758_v7, %v282_v32  ;;  %v453_v50 = vmul.f32 %v1760_v8, %v283_v33  ;;  %v323_v51 = vld [vmem:[%s1742_s6 + $0x150] sm:$0xff]  ;;  %v285_v56 = vld [vmem:[%s1742_s6 + $0x20] sm:$0xff]  ;;  %s2153_s30 = scalar_lea.vmem %s2467_s3, %s1338_s17 }
  0x2c   : > { %v472_v53 = vmul.f32 %v1766_v11, %v302_v37  ;;  %v473_v54 = vmul.f32 %v1768_v12, %v303_v38  ;;  %v622_v55 = vadd.f32 %v621_v41, %v469_v31  ;;  %v286_v57 = vld [vmem:[%s1742_s6 + $0x28] sm:$0xff]  ;;  %v287_v58 = vld [vmem:[%s1742_s6 + $0x30] sm:$0xff]  ;;  %v454_v59 = vmul.f32 %v1762_v9, %v284_v42  ;;  %v324_v61 = vld [vmem:[%s1742_s6 + $0x158] sm:$0xff] }
  0x2d   : > { %v641_v52 = vadd.f32 %v640_v39, %v486_v24  ;;  %v603_v60 = vadd.f32 %v452_v49, %v451_v43  ;;  %v491_v62 = vmul.f32 %v1756_v6, %v321_v44  ;;  %v492_v63 = vmul.f32 %v1758_v7, %v322_v45  ;;  %v288_v3 = vld [vmem:[%s1742_s6 + $0x38] sm:$0xff]  ;;  %v305_v5 = vld [vmem:[%s1742_s6 + $0xc0] sm:$0xff]  ;;  %v306_v13 = vld [vmem:[%s1742_s6 + $0xc8] sm:$0xff] }
  0x2e   : > { %v474_v1 = vmul.f32 %v1780_v23, %v304_v47  ;;  %v623_v2 = vadd.f32 %v622_v55, %v470_v40  ;;  %v493_v4 = vmul.f32 %v1760_v8, %v323_v51  ;;  %v455_v14 = vmul.f32 %v1764_v10, %v285_v56  ;;  %v325_v18 = vld [vmem:[%s1742_s6 + $0x160] sm:$0xff]  ;;  %v326_v21 = vld [vmem:[%s1742_s6 + $0x168] sm:$0xff]  ;;  %v327_v22 = vld [vmem:[%s1742_s6 + $0x170] sm:$0xff] }
  0x2f   : > { %v642_v0 = vadd.f32 %v641_v52, %v487_v34  ;;  %v456_v15 = vmul.f32 %v1766_v11, %v286_v57  ;;  %v457_v16 = vmul.f32 %v1768_v12, %v287_v58  ;;  %v604_v17 = vadd.f32 %v603_v60, %v453_v50  ;;  %v307_v26 = vld [vmem:[%s1742_s6 + $0xd0] sm:$0xff]  ;;  %v308_v29 = vld [vmem:[%s1742_s6 + $0xd8] sm:$0xff]  ;;  %v289_v37 = vld [vmem:[%s1742_s6 + $0x40] sm:$0xff] }
  0x30   : > { %v624_v20 = vadd.f32 %v623_v2, %v471_v48  ;;  %v494_v24 = vmul.f32 %v1762_v9, %v324_v61  ;;  %v648_v25 = vadd.f32 %v492_v63, %v491_v62  ;;  %v458_v27 = vmul.f32 %v1780_v23, %v288_v3  ;;  %v290_v38 = vld [vmem:[%s1742_s6 + $0x48] sm:$0xff]  ;;  %v328_v40 = vld [vmem:[%s1742_s6 + $0x178] sm:$0xff]  ;;  %v291_v44 = vld [vmem:[%s1742_s6 + $0x50] sm:$0xff] }
  0x31   : > { %v643_v19 = vadd.f32 %v642_v0, %v488_v35  ;;  %v605_v28 = vadd.f32 %v604_v17, %v454_v59  ;;  %v475_v30 = vmul.f32 %v1756_v6, %v305_v5  ;;  %v476_v31 = vmul.f32 %v1758_v7, %v306_v13  ;;  %v309_v48 = vld [vmem:[%s1742_s6 + $0xe0] sm:$0xff]  ;;  %v310_v49 = vld [vmem:[%s1742_s6 + $0xe8] sm:$0xff]  ;;  %v311_v52 = vld [vmem:[%s1742_s6 + $0xf0] sm:$0xff] }
  0x32   : > { %v625_v33 = vadd.f32 %v624_v20, %v472_v53  ;;  %v495_v34 = vmul.f32 %v1764_v10, %v325_v18  ;;  %v649_v35 = vadd.f32 %v648_v25, %v493_v4  ;;  %v496_v41 = vmul.f32 %v1766_v11, %v326_v21  ;;  %v292_v55 = vld [vmem:[%s1742_s6 + $0x58] sm:$0xff]  ;;  %v345_v60 = vld [vmem:[%s1742_s6 + $0x200] sm:$0xff]  ;;  %v346_v61 = vld [vmem:[%s1742_s6 + $0x208] sm:$0xff] }
  0x33   : > { %v644_v32 = vadd.f32 %v643_v19, %v489_v36  ;;  %v606_v39 = vadd.f32 %v605_v28, %v455_v14  ;;  %v497_v42 = vmul.f32 %v1768_v12, %v327_v22  ;;  %v477_v43 = vmul.f32 %v1760_v8, %v307_v26  ;;  %v293_v3 = vld [vmem:[%s1742_s6 + $0x60] sm:$0xff]  ;;  %v347_v4 = vld [vmem:[%s1742_s6 + $0x210] sm:$0xff]  ;;  %v312_v5 = vld [vmem:[%s1742_s6 + $0xf8] sm:$0xff] }
  0x34   : > { %v626_v36 = vadd.f32 %v625_v33, %v473_v54  ;;  %v650_v47 = vadd.f32 %v649_v35, %v494_v24  ;;  %v478_v50 = vmul.f32 %v1762_v9, %v308_v29  ;;  %v630_v53 = vadd.f32 %v476_v31, %v475_v30  ;;  %v294_v14 = vld [vmem:[%s1742_s6 + $0x68] sm:$0xff]  ;;  %v348_v20 = vld [vmem:[%s1742_s6 + $0x218] sm:$0xff]  ;;  %v337_v30 = vld [vmem:[%s1742_s6 + $0x1c0] sm:$0xff] }
  0x35   : > { %v645_v45 = vadd.f32 %v644_v32, %v490_v46  ;;  %v607_v51 = vadd.f32 %v606_v39, %v456_v15  ;;  %v459_v56 = vmul.f32 %v1756_v6, %v289_v37  ;;  %v460_v57 = vmul.f32 %v1758_v7, %v290_v38  ;;  %v295_v15 = vld [vmem:[%s1742_s6 + $0x70] sm:$0xff]  ;;  %v296_v25 = vld [vmem:[%s1742_s6 + $0x78] sm:$0xff]  ;;  %v349_v35 = vld [vmem:[%s1742_s6 + $0x220] sm:$0xff] }
  0x36   : > { %v627_v46 = vadd.f32 %v626_v36, %v474_v1  ;;  %v498_v54 = vmul.f32 %v1780_v23, %v328_v40  ;;  %v651_v58 = vadd.f32 %v650_v47, %v495_v34  ;;  %v461_v59 = vmul.f32 %v1760_v8, %v291_v44  ;;  %v339_v37 = vld [vmem:[%s1742_s6 + $0x1d0] sm:$0xff]  ;;  %v350_v40 = vld [vmem:[%s1742_s6 + $0x228] sm:$0xff]  ;;  %v340_v44 = vld [vmem:[%s1742_s6 + $0x1d8] sm:$0xff] }
  0x37   : > { %646 = vadd.xlane.f32.xlu2 %v645_v45  ;;  %v608_v62 = vadd.f32 %v607_v51, %v457_v16  ;;  %v479_v63 = vmul.f32 %v1764_v10, %v309_v48  ;;  %v480_v0 = vmul.f32 %v1766_v11, %v310_v49  ;;  %v631_v2 = vadd.f32 %v630_v53, %v477_v43  ;;  %v329_v49 = vld [vmem:[%s1742_s6 + $0x180] sm:$0xff]  ;;  %v352_v51 = vld [vmem:[%s1742_s6 + $0x238] sm:$0xff] }
  0x38   : > { %628 = vadd.xlane.f32.xlu1 %v627_v46  ;;  %v652_v1 = vadd.f32 %v651_v58, %v496_v41  ;;  %v481_v13 = vmul.f32 %v1768_v12, %v311_v52  ;;  %v462_v16 = vmul.f32 %v1762_v9, %v292_v55  ;;  %v612_v17 = vadd.f32 %v460_v57, %v459_v56  ;;  %v351_v41 = vld [vmem:[%s1742_s6 + $0x230] sm:$0xff]  ;;  %v330_v56 = vld [vmem:[%s1742_s6 + $0x188] sm:$0xff] }
  0x39   : > { %v609_v18 = vadd.f32 %v608_v62, %v458_v27  ;;  %v632_v19 = vadd.f32 %v631_v2, %v478_v50  ;;  %v515_v21 = vmul.f32 %v1756_v6, %v345_v60  ;;  %v516_v22 = vmul.f32 %v1758_v7, %v346_v61  ;;  %v338_v27 = vld [vmem:[%s1742_s6 + $0x1c8] sm:$0xff]  ;;  %v331_v57 = vld [vmem:[%s1742_s6 + $0x190] sm:$0xff] }
  0x3a   : > { %v653_v24 = vadd.f32 %v652_v1, %v497_v42  ;;  %v463_v26 = vmul.f32 %v1764_v10, %v293_v3  ;;  %v613_v28 = vadd.f32 %v612_v17, %v461_v59  ;;  %v517_v29 = vmul.f32 %v1760_v8, %v347_v4  ;;  %v341_v59 = vld [vmem:[%s1742_s6 + $0x1e0] sm:$0xff]  ;;  %v332_v3 = vld [vmem:[%s1742_s6 + $0x198] sm:$0xff] }
  0x3b   : > { %610 = vadd.xlane.f32.xlu0 %v609_v18  ;;  %v482_v31 = vmul.f32 %v1780_v23, %v312_v5  ;;  %v633_v32 = vadd.f32 %v632_v19, %v479_v63  ;;  %v464_v33 = vmul.f32 %v1766_v11, %v294_v14  ;;  %v465_v34 = vmul.f32 %v1768_v12, %v295_v15  ;;  %v342_v63 = vld [vmem:[%s1742_s6 + $0x1e8] sm:$0xff]  ;;  %v369_v15 = vld [vmem:[%s1742_s6 + $0x2c0] sm:$0xff] }
  0x3c   : > { %v654_v38 = vadd.f32 %v653_v24, %v498_v54  ;;  %v614_v39 = vadd.f32 %v613_v28, %v462_v16  ;;  %v518_v42 = vmul.f32 %v1762_v9, %v348_v20  ;;  %v675_v43 = vadd.f32 %v516_v22, %v515_v21  ;;  %v333_v20 = vld [vmem:[%s1742_s6 + $0x1a0] sm:$0xff]  ;;  %v370_v21 = vld [vmem:[%s1742_s6 + $0x2c8] sm:$0xff]  ;;  %v371_v22 = vld [vmem:[%s1742_s6 + $0x2d0] sm:$0xff] }
  0x3d   : > { %v634_v45 = vadd.f32 %v633_v32, %v480_v0  ;;  %v466_v36 = vmul.f32 %v1780_v23, %v296_v25  ;;  %v507_v47 = vmul.f32 %v1756_v6, %v337_v30  ;;  %v508_v48 = vmul.f32 %v1758_v7, %v338_v27  ;;  %v343_v0 = vld [vmem:[%s1742_s6 + $0x1f0] sm:$0xff]  ;;  %v344_v24 = vld [vmem:[%s1742_s6 + $0x1f8] sm:$0xff]  ;;  %v334_v28 = vld [vmem:[%s1742_s6 + $0x1a8] sm:$0xff] }
  0x3e   : > { %v615_v50 = vadd.f32 %v614_v39, %v463_v26  ;;  %v519_v52 = vmul.f32 %v1764_v10, %v349_v35  ;;  %v676_v53 = vadd.f32 %v675_v43, %v517_v29  ;;  %v509_v55 = vmul.f32 %v1760_v8, %v339_v37 }
  0x3f   : > { %655 = vadd.xlane.f32.xlu2 %v654_v38  ;;  %v635_v46 = vadd.f32 %v634_v45, %v481_v13  ;;  %v520_v54 = vmul.f32 %v1766_v11, %v350_v40  ;;  %v521_v58 = vmul.f32 %v1768_v12, %v351_v41  ;;  %v510_v60 = vmul.f32 %v1762_v9, %v340_v44  ;;  %v361_v41 = vld [vmem:[%s1742_s6 + $0x280] sm:$0xff] }
  0x40   : > { %v616_v61 = vadd.f32 %v615_v50, %v464_v33  ;;  %v677_v62 = vadd.f32 %v676_v53, %v518_v42  ;;  %v666_v2 = vadd.f32 %v508_v48, %v507_v47  ;;  %v499_v4 = vmul.f32 %v1756_v6, %v329_v49  ;;  %v335_v33 = vld [vmem:[%s1742_s6 + $0x1b0] sm:$0xff]  ;;  %v362_v42 = vld [vmem:[%s1742_s6 + $0x288] sm:$0xff]  ;;  %v373_v47 = vld [vmem:[%s1742_s6 + $0x2e0] sm:$0xff] }
  0x41   : > { %v636_v1 = vadd.f32 %v635_v46, %v482_v31  ;;  %v522_v5 = vmul.f32 %v1780_v23, %v352_v51  ;;  %v500_v13 = vmul.f32 %v1758_v7, %v330_v56  ;;  %v501_v14 = vmul.f32 %v1760_v8, %v331_v57  ;;  %v363_v48 = vld [vmem:[%s1742_s6 + $0x290] sm:$0xff]  ;;  %v336_v49 = vld [vmem:[%s1742_s6 + $0x1b8] sm:$0xff] }
  0x42   : > { %v617_v16 = vadd.f32 %v616_v61, %v465_v34  ;;  %v678_v17 = vadd.f32 %v677_v62, %v519_v52  ;;  %v511_v18 = vmul.f32 %v1764_v10, %v341_v59  ;;  %v667_v19 = vadd.f32 %v666_v2, %v509_v55  ;;  %v372_v34 = vld [vmem:[%s1742_s6 + $0x2d8] sm:$0xff]  ;;  %v374_v52 = vld [vmem:[%s1742_s6 + $0x2e8] sm:$0xff]  ;;  %v375_v53 = vld [vmem:[%s1742_s6 + $0x2f0] sm:$0xff] }
  0x43   : > { %637 = vadd.xlane.f32.xlu1 %v636_v1  ;;  %v512_v25 = vmul.f32 %v1766_v11, %v342_v63  ;;  %v513_v26 = vmul.f32 %v1768_v12, %v343_v0  ;;  %v502_v29 = vmul.f32 %v1762_v9, %v332_v3  ;;  %v657_v30 = vadd.f32 %v500_v13, %v499_v4  ;;  %v365_v63 = vld [vmem:[%s1742_s6 + $0x2a0] sm:$0xff]  ;;  %v354_v3 = vld [vmem:[%s1742_s6 + $0x248] sm:$0xff] }
  0x44   : > { %v618_v27 = vadd.f32 %v617_v16, %v466_v36  ;;  %v679_v31 = vadd.f32 %v678_v17, %v520_v54  ;;  %v668_v32 = vadd.f32 %v667_v19, %v510_v60  ;;  %v539_v35 = vmul.f32 %v1756_v6, %v369_v15  ;;  %v364_v54 = vld [vmem:[%s1742_s6 + $0x298] sm:$0xff]  ;;  %v353_v2 = vld [vmem:[%s1742_s6 + $0x240] sm:$0xff]  ;;  %v355_v15 = vld [vmem:[%s1742_s6 + $0x250] sm:$0xff] }
  0x45   : > { %v503_v37 = vmul.f32 %v1764_v10, %v333_v20  ;;  %v658_v38 = vadd.f32 %v657_v30, %v501_v14  ;;  %v540_v39 = vmul.f32 %v1758_v7, %v370_v21  ;;  %v541_v40 = vmul.f32 %v1760_v8, %v371_v22  ;;  %v367_v19 = vld [vmem:[%s1742_s6 + $0x2b0] sm:$0xff]  ;;  %v356_v22 = vld [vmem:[%s1742_s6 + $0x258] sm:$0xff] }
  0x46   : > { %619 = vadd.xlane.f32.xlu0 %v618_v27  ;;  %v680_v43 = vadd.f32 %v679_v31, %v521_v58  ;;  %v514_v44 = vmul.f32 %v1780_v23, %v344_v24  ;;  %v669_v45 = vadd.f32 %v668_v32, %v511_v18  ;;  %v504_v36 = vmul.f32 %v1766_v11, %v334_v28  ;;  %v366_v18 = vld [vmem:[%s1742_s6 + $0x2a8] sm:$0xff] }
  0x47   : > { %v505_v50 = vmul.f32 %v1768_v12, %v335_v33  ;;  %v659_v51 = vadd.f32 %v658_v38, %v502_v29  ;;  %v542_v55 = vmul.f32 %v1762_v9, %v372_v34  ;;  %v702_v56 = vadd.f32 %v540_v39, %v539_v35  ;;  %v393_v33 = vld [vmem:[%s1742_s6 + $0x380] sm:$0xff]  ;;  %v394_v34 = vld [vmem:[%s1742_s6 + $0x388] sm:$0xff]  ;;  %v395_v35 = vld [vmem:[%s1742_s6 + $0x390] sm:$0xff] }
  0x48   : > { %v681_v57 = vadd.f32 %v680_v43, %v522_v5  ;;  %v670_v46 = vadd.f32 %v669_v45, %v512_v25  ;;  %v531_v58 = vmul.f32 %v1756_v6, %v361_v41  ;;  %v532_v59 = vmul.f32 %v1758_v7, %v362_v42  ;;  %v376_v5 = vld [vmem:[%s1742_s6 + $0x2f8] sm:$0xff]  ;;  %v358_v45 = vld [vmem:[%s1742_s6 + $0x268] sm:$0xff] }
  0x49   : > { %v660_v60 = vadd.f32 %v659_v51, %v503_v37  ;;  %v543_v61 = vmul.f32 %v1764_v10, %v373_v47  ;;  %v703_v62 = vadd.f32 %v702_v56, %v541_v40  ;;  %v533_v0 = vmul.f32 %v1760_v8, %v363_v48  ;;  %v368_v25 = vld [vmem:[%s1742_s6 + $0x2b8] sm:$0xff]  ;;  %v357_v40 = vld [vmem:[%s1742_s6 + $0x260] sm:$0xff] }
  0x4a   : > { %682 = vadd.xlane.f32.xlu2 %v681_v57  ;;  %v671_v4 = vadd.f32 %v670_v46, %v513_v26  ;;  %v506_v1 = vmul.f32 %v1780_v23, %v336_v49  ;;  %v544_v13 = vmul.f32 %v1766_v11, %v374_v52  ;;  %v545_v14 = vmul.f32 %v1768_v12, %v375_v53  ;;  %v396_v48 = vld [vmem:[%s1742_s6 + $0x398] sm:$0xff]  ;;  %v385_v53 = vld [vmem:[%s1742_s6 + $0x340] sm:$0xff] }
  0x4b   : > { %v661_v16 = vadd.f32 %v660_v60, %v504_v36  ;;  %v704_v17 = vadd.f32 %v703_v62, %v542_v55  ;;  %v534_v20 = vmul.f32 %v1762_v9, %v364_v54  ;;  %v693_v21 = vadd.f32 %v532_v59, %v531_v58  ;;  %v359_v36 = vld [vmem:[%s1742_s6 + $0x270] sm:$0xff]  ;;  %v397_v54 = vld [vmem:[%s1742_s6 + $0x3a0] sm:$0xff]  ;;  %v386_v58 = vld [vmem:[%s1742_s6 + $0x348] sm:$0xff] }
  0x4c   : > { %v672_v24 = vadd.f32 %v671_v4, %v514_v44  ;;  %v535_v26 = vmul.f32 %v1764_v10, %v365_v63  ;;  %v523_v28 = vmul.f32 %v1756_v6, %v353_v2  ;;  %v524_v29 = vmul.f32 %v1758_v7, %v354_v3  ;;  %v387_v59 = vld [vmem:[%s1742_s6 + $0x350] sm:$0xff]  ;;  %v360_v60 = vld [vmem:[%s1742_s6 + $0x278] sm:$0xff]  ;;  %v398_v63 = vld [vmem:[%s1742_s6 + $0x3a8] sm:$0xff] }
  0x4d   : > { %v662_v30 = vadd.f32 %v661_v16, %v505_v50  ;;  %v705_v27 = vadd.f32 %v704_v17, %v543_v61  ;;  %v694_v31 = vadd.f32 %v693_v21, %v533_v0  ;;  %v525_v32 = vmul.f32 %v1760_v8, %v355_v15 }
  0x4e   : > { %673 = vadd.xlane.f32.xlu1 %v672_v24  ;;  %v546_v37 = vmul.f32 %v1780_v23, %v376_v5  ;;  %v536_v38 = vmul.f32 %v1766_v11, %v366_v18  ;;  %v537_v39 = vmul.f32 %v1768_v12, %v367_v19  ;;  %v526_v41 = vmul.f32 %v1762_v9, %v356_v22  ;;  %v399_v5 = vld [vmem:[%s1742_s6 + $0x3b0] sm:$0xff]  ;;  %v377_v19 = vld [vmem:[%s1742_s6 + $0x300] sm:$0xff] }
  0x4f   : > { %v663_v42 = vadd.f32 %v662_v30, %v506_v1  ;;  %v706_v43 = vadd.f32 %v705_v27, %v544_v13  ;;  %v695_v44 = vadd.f32 %v694_v31, %v534_v20  ;;  %v684_v47 = vadd.f32 %v524_v29, %v523_v28  ;;  %v388_v13 = vld [vmem:[%s1742_s6 + $0x358] sm:$0xff]  ;;  %v378_v20 = vld [vmem:[%s1742_s6 + $0x308] sm:$0xff]  ;;  %v379_v28 = vld [vmem:[%s1742_s6 + $0x310] sm:$0xff] }
  0x50   : > { %v538_v49 = vmul.f32 %v1780_v23, %v368_v25  ;;  %v563_v50 = vmul.f32 %v1756_v6, %v393_v33  ;;  %v564_v51 = vmul.f32 %v1758_v7, %v394_v34  ;;  %v565_v52 = vmul.f32 %v1760_v8, %v395_v35  ;;  %v400_v29 = vld [vmem:[%s1742_s6 + $0x3b8] sm:$0xff]  ;;  %v390_v31 = vld [vmem:[%s1742_s6 + $0x368] sm:$0xff] }
  0x51   : > { %664 = vadd.xlane.f32.xlu0 %v663_v42  ;;  %v707_v55 = vadd.f32 %v706_v43, %v545_v14  ;;  %v696_v56 = vadd.f32 %v695_v44, %v535_v26  ;;  %v527_v57 = vmul.f32 %v1764_v10, %v357_v40  ;;  %v685_v46 = vadd.f32 %v684_v47, %v525_v32  ;;  %v389_v26 = vld [vmem:[%s1742_s6 + $0x360] sm:$0xff]  ;;  %v391_v32 = vld [vmem:[%s1742_s6 + $0x370] sm:$0xff]  ;;  %v418_v47 = vld [vmem:[%s1742_s6 + $0x448] sm:$0xff] }
  0x52   : > { %v528_v61 = vmul.f32 %v1766_v11, %v358_v45  ;;  %v529_v62 = vmul.f32 %v1768_v12, %v359_v36  ;;  %v566_v0 = vmul.f32 %v1762_v9, %v396_v48  ;;  %v729_v2 = vadd.f32 %v564_v51, %v563_v50  ;;  %v381_v44 = vld [vmem:[%s1742_s6 + $0x320] sm:$0xff]  ;;  %v392_v50 = vld [vmem:[%s1742_s6 + $0x378] sm:$0xff] }
  0x53   : > { %v708_v3 = vadd.f32 %v707_v55, %v546_v37  ;;  %v697_v4 = vadd.f32 %v696_v56, %v536_v38  ;;  %v686_v1 = vadd.f32 %v685_v46, %v526_v41  ;;  %v555_v14 = vmul.f32 %v1756_v6, %v385_v53  ;;  %v380_v38 = vld [vmem:[%s1742_s6 + $0x318] sm:$0xff]  ;;  %v417_v36 = vld [vmem:[%s1742_s6 + $0x440] sm:$0xff]  ;;  %v419_v53 = vld [vmem:[%s1742_s6 + $0x450] sm:$0xff] }
  0x54   : > { %v567_v15 = vmul.f32 %v1764_v10, %v397_v54  ;;  %v730_v16 = vadd.f32 %v729_v2, %v565_v52  ;;  %v556_v17 = vmul.f32 %v1758_v7, %v386_v58  ;;  %v557_v18 = vmul.f32 %v1760_v8, %v387_v59  ;;  %v383_v46 = vld [vmem:[%s1742_s6 + $0x330] sm:$0xff]  ;;  %v420_v59 = vld [vmem:[%s1742_s6 + $0x458] sm:$0xff] }
  0x55   : > { %709 = vadd.xlane.f32.xlu2 %v708_v3  ;;  %v698_v21 = vadd.f32 %v697_v4, %v537_v39  ;;  %v530_v22 = vmul.f32 %v1780_v23, %v360_v60  ;;  %v687_v24 = vadd.f32 %v686_v1, %v527_v57  ;;  %v568_v25 = vmul.f32 %v1766_v11, %v398_v63  ;;  %v382_v57 = vld [vmem:[%s1742_s6 + $0x328] sm:$0xff] }
  0x56   : > { %v569_v30 = vmul.f32 %v1768_v12, %v399_v5  ;;  %v731_v27 = vadd.f32 %v730_v16, %v566_v0  ;;  %v558_v33 = vmul.f32 %v1762_v9, %v388_v13  ;;  %v720_v34 = vadd.f32 %v556_v17, %v555_v14  ;;  %v409_v5 = vld [vmem:[%s1742_s6 + $0x400] sm:$0xff]  ;;  %v410_v13 = vld [vmem:[%s1742_s6 + $0x408] sm:$0xff]  ;;  %v411_v14 = vld [vmem:[%s1742_s6 + $0x410] sm:$0xff] }
  0x57   : > { %v699_v35 = vadd.f32 %v698_v21, %v538_v49  ;;  %v688_v37 = vadd.f32 %v687_v24, %v528_v61  ;;  %v547_v39 = vmul.f32 %v1756_v6, %v377_v19  ;;  %v548_v40 = vmul.f32 %v1758_v7, %v378_v20  ;;  %v384_v61 = vld [vmem:[%s1742_s6 + $0x338] sm:$0xff]  ;;  %v422_v24 = vld [vmem:[%s1742_s6 + $0x468] sm:$0xff] }
  0x58   : > { %v732_v41 = vadd.f32 %v731_v27, %v567_v15  ;;  %v559_v42 = vmul.f32 %v1764_v10, %v389_v26  ;;  %v721_v43 = vadd.f32 %v720_v34, %v557_v18  ;;  %v549_v45 = vmul.f32 %v1760_v8, %v379_v28  ;;  %v421_v18 = vld [vmem:[%s1742_s6 + $0x460] sm:$0xff]  ;;  %v412_v28 = vld [vmem:[%s1742_s6 + $0x418] sm:$0xff] }
  0x59   : > { %700 = vadd.xlane.f32.xlu1 %v699_v35  ;;  %v689_v48 = vadd.f32 %v688_v37, %v529_v62  ;;  %v570_v49 = vmul.f32 %v1780_v23, %v400_v29  ;;  %v560_v51 = vmul.f32 %v1766_v11, %v390_v31  ;;  %v561_v52 = vmul.f32 %v1768_v12, %v391_v32  ;;  %v401_v32 = vld [vmem:[%s1742_s6 + $0x3c0] sm:$0xff] }
  0x5a   : > { %v733_v55 = vadd.f32 %v732_v41, %v568_v25  ;;  %v722_v56 = vadd.f32 %v721_v43, %v558_v33  ;;  %v550_v54 = vmul.f32 %v1762_v9, %v380_v38  ;;  %v711_v58 = vadd.f32 %v548_v40, %v547_v39  ;;  %v423_v25 = vld [vmem:[%s1742_s6 + $0x470] sm:$0xff]  ;;  %v413_v38 = vld [vmem:[%s1742_s6 + $0x420] sm:$0xff]  ;;  %v402_v39 = vld [vmem:[%s1742_s6 + $0x3c8] sm:$0xff] }
  0x5b   : > { %v690_v60 = vadd.f32 %v689_v48, %v530_v22  ;;  %v551_v62 = vmul.f32 %v1764_v10, %v381_v44  ;;  %v587_v63 = vmul.f32 %v1756_v6, %v417_v36  ;;  %v588_v0 = vmul.f32 %v1758_v7, %v418_v47  ;;  %v403_v40 = vld [vmem:[%s1742_s6 + $0x3d0] sm:$0xff]  ;;  %v424_v41 = vld [vmem:[%s1742_s6 + $0x478] sm:$0xff]  ;;  %v414_v44 = vld [vmem:[%s1742_s6 + $0x428] sm:$0xff] }
  0x5c   : > { %v734_v2 = vadd.f32 %v733_v55, %v569_v30  ;;  %v723_v3 = vadd.f32 %v722_v56, %v559_v42  ;;  %v712_v4 = vadd.f32 %v711_v58, %v549_v45  ;;  %v589_v1 = vmul.f32 %v1760_v8, %v419_v53 }
  0x5d   : > { %691 = vadd.xlane.f32.xlu0 %v690_v60  ;;  %v562_v15 = vmul.f32 %v1780_v23, %v392_v50  ;;  %v552_v16 = vmul.f32 %v1766_v11, %v382_v57  ;;  %v553_v17 = vmul.f32 %v1768_v12, %v383_v46  ;;  %v590_v19 = vmul.f32 %v1762_v9, %v420_v59  ;;  %v415_v50 = vld [vmem:[%s1742_s6 + $0x430] sm:$0xff]  ;;  %v425_v46 = vld [vmem:[%s1742_s6 + $0x480] sm:$0xff] }
  0x5e   : > { %v735_v20 = vadd.f32 %v734_v2, %v570_v49  ;;  %v724_v21 = vadd.f32 %v723_v3, %v560_v51  ;;  %v713_v22 = vadd.f32 %v712_v4, %v550_v54  ;;  %v756_v26 = vadd.f32 %v588_v0, %v587_v63  ;;  %v404_v51 = vld [vmem:[%s1742_s6 + $0x3d8] sm:$0xff]  ;;  %v426_v54 = vld [vmem:[%s1742_s6 + $0x488] sm:$0xff]  ;;  %v427_v63 = vld [vmem:[%s1742_s6 + $0x490] sm:$0xff] }
  0x5f   : > { %v554_v29 = vmul.f32 %v1780_v23, %v384_v61  ;;  %v579_v30 = vmul.f32 %v1756_v6, %v409_v5  ;;  %v580_v27 = vmul.f32 %v1758_v7, %v410_v13  ;;  %v581_v31 = vmul.f32 %v1760_v8, %v411_v14  ;;  %v416_v0 = vld [vmem:[%s1742_s6 + $0x438] sm:$0xff]  ;;  %v406_v4 = vld [vmem:[%s1742_s6 + $0x3e8] sm:$0xff] }
  0x60   : > { %736 = vadd.xlane.f32.xlu2 %v735_v20  ;;  %v725_v33 = vadd.f32 %v724_v21, %v561_v52  ;;  %v714_v34 = vadd.f32 %v713_v22, %v551_v62  ;;  %v591_v35 = vmul.f32 %v1764_v10, %v421_v18  ;;  %v757_v37 = vadd.f32 %v756_v26, %v589_v1  ;;  %v405_v62 = vld [vmem:[%s1742_s6 + $0x3e0] sm:$0xff] }
  0x61   : > { %v592_v42 = vmul.f32 %v1766_v11, %v422_v24  ;;  %v593_v43 = vmul.f32 %v1768_v12, %v423_v25  ;;  %v582_v45 = vmul.f32 %v1762_v9, %v412_v28  ;;  %v747_v36 = vadd.f32 %v580_v27, %v579_v30  ;;  %v429_v28 = vld [vmem:[%s1742_s6 + $0x4a0] sm:$0xff]  ;;  %v408_v30 = vld [vmem:[%s1742_s6 + $0x3f8] sm:$0xff] }
  0x62   : > { %v726_v47 = vadd.f32 %v725_v33, %v562_v15  ;;  %v715_v48 = vadd.f32 %v714_v34, %v552_v16  ;;  %v758_v49 = vadd.f32 %v757_v37, %v590_v19  ;;  %v571_v52 = vmul.f32 %v1756_v6, %v401_v32  ;;  %v428_v15 = vld [vmem:[%s1742_s6 + $0x498] sm:$0xff]  ;;  %v407_v19 = vld [vmem:[%s1742_s6 + $0x3f0] sm:$0xff]  ;;  %v430_v33 = vld [vmem:[%s1742_s6 + $0x4a8] sm:$0xff] }
  0x63   : > { %v583_v53 = vmul.f32 %v1764_v10, %v413_v38  ;;  %v748_v55 = vadd.f32 %v747_v36, %v581_v31  ;;  %v572_v56 = vmul.f32 %v1758_v7, %v402_v39  ;;  %v573_v57 = vmul.f32 %v1760_v8, %v403_v40  ;;  %v431_v40 = vld [vmem:[%s1742_s6 + $0x4b0] sm:$0xff]  ;;  %v432_v36 = vld [vmem:[%s1742_s6 + $0x4b8] sm:$0xff] }
  0x64   : > { %727 = vadd.xlane.f32.xlu1 %v726_v47  ;;  %v716_v58 = vadd.f32 %v715_v48, %v553_v17  ;;  %v594_v59 = vmul.f32 %v1780_v23, %v424_v41  ;;  %v759_v60 = vadd.f32 %v758_v49, %v591_v35  ;;  %v584_v61 = vmul.f32 %v1766_v11, %v414_v44 }
  0x65   : > { %v585_v2 = vmul.f32 %v1768_v12, %v415_v50  ;;  %v749_v3 = vadd.f32 %v748_v55, %v582_v45  ;;  %v574_v1 = vmul.f32 %v1762_v9, %v404_v51  ;;  %v738_v5 = vadd.f32 %v572_v56, %v571_v52 }
  0x66   : > { %v717_v13 = vadd.f32 %v716_v58, %v554_v29  ;;  %v760_v14 = vadd.f32 %v759_v60, %v592_v42  ;;  %v595_v16 = vmul.f32 %v1756_v6, %v425_v46  ;;  %v596_v17 = vmul.f32 %v1758_v7, %v426_v54  ;;  %v2093_v58 = vld [vmem:[#allocation3] ss:$0 sm:$0xff] }
  0x67   : > { %v750_v18 = vadd.f32 %v749_v3, %v583_v53  ;;  %v575_v20 = vmul.f32 %v1764_v10, %v405_v62  ;;  %v739_v21 = vadd.f32 %v738_v5, %v573_v57  ;;  %v597_v22 = vmul.f32 %v1760_v8, %v427_v63 }
  0x68   : > { %718 = vadd.xlane.f32.xlu0 %v717_v13  ;;  %v761_v24 = vadd.f32 %v760_v14, %v593_v43  ;;  %v586_v25 = vmul.f32 %v1780_v23, %v416_v0  ;;  %v576_v26 = vmul.f32 %v1766_v11, %v406_v4  ;;  %v598_v7 = vmul.f32 %v1762_v9, %v428_v15 }
  0x69   : > { %v751_v29 = vadd.f32 %v750_v18, %v584_v61  ;;  %v740_v6 = vadd.f32 %v739_v21, %v574_v1  ;;  %v765_v27 = vadd.f32 %v596_v17, %v595_v16  ;;  %v577_v32 = vmul.f32 %v1768_v12, %v407_v19 }
  0x6a   : > { %v762_v31 = vadd.f32 %v761_v24, %v594_v59  ;;  %v599_v35 = vmul.f32 %v1764_v10, %v429_v28  ;;  %v1630_v38 = vmov 0.0   ;;  %v578_v39 = vmul.f32 %v1780_v23, %v408_v30 }
  0x6b   : > { %v752_v8 = vadd.f32 %v751_v29, %v585_v2  ;;  %v741_v34 = vadd.f32 %v740_v6, %v575_v20  ;;  %v766_v37 = vadd.f32 %v765_v27, %v597_v22  ;;  %247 = vst.msk [vmem:[#allocation2 + $0x20] sm:$0xff] %vm242_vm0, %v1630_v38  ;;  %v600_v42 = vmul.f32 %v1766_v11, %v430_v33 }
  0x6c   : > { %763 = vadd.xlane.f32.xlu2 %v762_v31  ;;  %243 = vst.msk [vmem:[#allocation2] sm:$0xff] %vm242_vm0, %v1630_v38  ;;  %v601_v44 = vmul.f32 %v1768_v12, %v431_v40  ;;  %v602_v11 = vmul.f32 %v1780_v23, %v432_v36 }
  0x6d   : > { %v753_v9 = vadd.f32 %v752_v8, %v586_v25  ;;  %v742_v41 = vadd.f32 %v741_v34, %v576_v26  ;;  %v767_v43 = vadd.f32 %v766_v37, %v598_v7  ;;  %244 = vst.msk [vmem:[#allocation2 + $0x8] sm:$0xff] %vm242_vm0, %v1630_v38 }
  0x6e   : > { %245 = vst.msk [vmem:[#allocation2 + $0x10] sm:$0xff] %vm242_vm0, %v1630_v38 }
  0x6f   : > { %754 = vadd.xlane.f32.xlu1 %v753_v9  ;;  %v743_v10 = vadd.f32 %v742_v41, %v577_v32  ;;  %v768_v45 = vadd.f32 %v767_v43, %v599_v35  ;;  %246 = vst.msk [vmem:[#allocation2 + $0x18] sm:$0xff] %vm242_vm0, %v1630_v38 }
  0x70   : > { %248 = vst.msk [vmem:[#allocation2 + $0x28] sm:$0xff] %vm242_vm0, %v1630_v38 }
  0x71   : > { %v744_v47 = vadd.f32 %v743_v10, %v578_v39  ;;  %v769_v48 = vadd.f32 %v768_v45, %v600_v42  ;;  %249 = vst.msk [vmem:[#allocation2 + $0x30] sm:$0xff] %vm242_vm0, %v1630_v38 }
  0x72   : > { %250 = vst.msk [vmem:[#allocation2 + $0x38] sm:$0xff] %vm242_vm0, %v1630_v38  ;;  %v266_v23 = vld [vmem:[#allocation2 + $0x20] sm:$0xff] }
  0x73   : > { %745 = vadd.xlane.f32.xlu0 %v744_v47  ;;  %v770_v49 = vadd.f32 %v769_v48, %v601_v44  ;;  %251 = vst.msk [vmem:[#allocation2 + $0x40] sm:$0xff] %vm242_vm0, %v1630_v38  ;;  %v262_v56 = vld [vmem:[#allocation2] sm:$0xff] }
  0x74   : > { %252 = vst.msk [vmem:[#allocation2 + $0x48] sm:$0xff] %vm242_vm0, %v1630_v38  ;;  %v263_v5 = vld [vmem:[#allocation2 + $0x8] sm:$0xff] }
  0x75   : > { %253 = vst.msk [vmem:[#allocation2 + $0x50] sm:$0xff] %vm242_vm0, %v1630_v38  ;;  %v771_v12 = vadd.f32 %v770_v49, %v602_v11  ;;  %v264_v51 = vld [vmem:[#allocation2 + $0x10] sm:$0xff] }
  0x76   : > { %254 = vst.msk [vmem:[#allocation2 + $0x58] sm:$0xff] %vm242_vm0, %v1630_v38  ;;  %v265_v63 = vld [vmem:[#allocation2 + $0x18] sm:$0xff] }
  0x77   : > { %255 = vst.msk [vmem:[#allocation2 + $0x60] sm:$0xff] %vm242_vm0, %v1630_v38  ;;  %v267_v54 = vld [vmem:[#allocation2 + $0x28] sm:$0xff] }
  0x78   : > { %256 = vst.msk [vmem:[#allocation2 + $0x68] sm:$0xff] %vm242_vm0, %v1630_v38  ;;  %v268_v33 = vld [vmem:[#allocation2 + $0x30] sm:$0xff] }
  0x79   : > { %257 = vst.msk [vmem:[#allocation2 + $0x70] sm:$0xff] %vm242_vm0, %v1630_v38  ;;  %v269_v29 = vld [vmem:[#allocation2 + $0x38] sm:$0xff] }
  0x7a   : > { %258 = vst.msk [vmem:[#allocation2 + $0x78] sm:$0xff] %vm242_vm0, %v1630_v38  ;;  %v270_v20 = vld [vmem:[#allocation2 + $0x40] sm:$0xff] }
  0x7b   : > { %772 = vadd.xlane.f32.xlu0 %v771_v12  ;;  %259 = vst.msk [vmem:[#allocation2 + $0x80] sm:$0xff] %vm242_vm0, %v1630_v38 }
  0x7c   : > { %260 = vst.msk [vmem:[#allocation2 + $0x88] sm:$0xff] %vm242_vm0, %v1630_v38 }
  0x7d   : > { %261 = vst.msk [vmem:[#allocation2 + $0x90] sm:$0xff] %vm242_vm0, %v1630_v38 }
  0xaa   : > { %v647_v50 = vpop.xlane.xlu2 %646 }
  0xab   : > { %v778_v52 = vadd.f32 %v647_v50, %v266_v23  ;;  %v629_v53 = vpop.xlane.xlu1 %628 }
  0xac   : > { %v776_v55 = vadd.f32 %v629_v53, %v264_v51  ;;  %v272_v53 = vld [vmem:[#allocation2 + $0x50] sm:$0xff] }
  0xad   : > { %798 = vst.msk [vmem:[#allocation2 + $0x20] sm:$0xff] %vm242_vm0, %v778_v52  ;;  %v273_v52 = vld [vmem:[#allocation2 + $0x58] sm:$0xff] }
  0xae   : > { %796 = vst.msk [vmem:[#allocation2 + $0x10] sm:$0xff] %vm242_vm0, %v776_v55  ;;  %v611_v57 = vpop.xlane.xlu0 %610 }
  0xaf   : > { %v774_v46 = vadd.f32 %v611_v57, %v262_v56 }
  0xb1   : > { %794 = vst.msk [vmem:[#allocation2] sm:$0xff] %vm242_vm0, %v774_v46 }
  0xb2   : > { %v656_v59 = vpop.xlane.xlu2 %655 }
  0xb3   : > { %v779_v60 = vadd.f32 %v656_v59, %v267_v54 }
  0xb4   : > { %v820_v61 = vld [vmem:[#allocation2 + $0x20] sm:$0xff] }
  0xb5   : > { %v843_v62 = vadd.f32 %v2093_v58, %v820_v61  ;;  %799 = vst.msk [vmem:[#allocation2 + $0x28] sm:$0xff] %vm242_vm0, %v779_v60  ;;  %v818_v0 = vld [vmem:[#allocation2 + $0x10] sm:$0xff] }
  0xb6   : > { %v841_v3 = vadd.f32 %v2093_v58, %v818_v0  ;;  %v638_v4 = vpop.xlane.xlu1 %637 }
  0xb7   : > { %v1343_v2 = vmul.f32 -1.442695, %v843_v62  ;;  %v777_v1 = vadd.f32 %v638_v4, %v265_v63 }
  0xb8   : > { %v1341_v13 = vmul.f32 -1.442695, %v841_v3  ;;  %v816_v14 = vld [vmem:[#allocation2] sm:$0xff] }
  0xb9   : > { %1435 = vpow2.f32 %v1343_v2  ;;  %v839_v15 = vadd.f32 %v2093_v58, %v816_v14  ;;  %797 = vst.msk [vmem:[#allocation2 + $0x18] sm:$0xff] %vm242_vm0, %v777_v1  ;;  %v620_v16 = vpop.xlane.xlu0 %619 }
  0xba   : > { %1437 = vpow2.f32 %v1341_v13  ;;  %v775_v17 = vadd.f32 %v620_v16, %v263_v5 }
  0xbb   : > { %v1339_v18 = vmul.f32 -1.442695, %v839_v15 }
  0xbc   : > { %v821_v19 = vld [vmem:[#allocation2 + $0x28] sm:$0xff]  ;;  %795 = vst.msk [vmem:[#allocation2 + $0x8] sm:$0xff] %vm242_vm0, %v775_v17 }
  0xbd   : > { %v844_v21 = vadd.f32 %v2093_v58, %v821_v19  ;;  %1439 = vpow2.f32 %v1339_v18  ;;  %v683_v22 = vpop.xlane.xlu2 %682 }
  0xbe   : > { %v782_v26 = vadd.f32 %v683_v22, %v270_v20 }
  0xbf   : > { %v1436_v24 = vpop.eup %1435  ;;  %v1344_v25 = vmul.f32 -1.442695, %v844_v21 }
  0xc0   : > { %v2103_v28 = vadd.f32 1.0, %v1436_v24  ;;  %v1438_v30 = vpop.eup %1437  ;;  %v819_v6 = vld [vmem:[#allocation2 + $0x18] sm:$0xff]  ;;  %802 = vst.msk [vmem:[#allocation2 + $0x40] sm:$0xff] %vm242_vm0, %v782_v26 }
  0xc1   : > { %1441 = vpow2.f32 %v1344_v25  ;;  %v674_v7 = vpop.xlane.xlu1 %673  ;;  %v2108_v27 = vadd.f32 1.0, %v1438_v30  ;;  %v842_v31 = vadd.f32 %v2093_v58, %v819_v6 }
  0xc2   : > { %1443 = vrcp.f32 %v2103_v28  ;;  %v781_v32 = vadd.f32 %v674_v7, %v269_v29  ;;  %v1003_v35 = vand.u32 2147483647, %v2103_v28  ;;  %v1005_v42 = vand.u32 2147483648, %v2103_v28 }
  0xc3   : > { %v1440_v8 = vpop.eup %1439  ;;  %v817_v34 = vld [vmem:[#allocation2 + $0x8] sm:$0xff]  ;;  %1445 = vrcp.f32 %v2108_v27  ;;  %v1342_v39 = vmul.f32 -1.442695, %v842_v31  ;;  %v973_v10 = vand.u32 2147483647, %v2108_v27  ;;  %vm999_vm1 = vweird.f32 %v2103_v28 }
  0xc4   : > { %801 = vst.msk [vmem:[#allocation2 + $0x38] sm:$0xff] %vm242_vm0, %v781_v32  ;;  %v665_v37 = vpop.xlane.xlu0 %664  ;;  %v2118_v38 = vadd.f32 1.0, %v1440_v8  ;;  %v840_v40 = vadd.f32 %v2093_v58, %v817_v34  ;;  %vm2133_vm2 = vcmp.eq.f32.partialorder %v1003_v35, 8.507059e+37  ;;  %v1006_v23 = vor.u32 1.1754944e-38, %v1005_v42 }
  0xc5   : > { %v780_v9 = vadd.f32 %v665_v37, %v268_v33  ;;  %v975_v50 = vand.u32 2147483648, %v2108_v27  ;;  %vm969_vm3 = vweird.f32 %v2108_v27  ;;  %vm2142_vm4 = vcmp.eq.f32.partialorder %v973_v10, 8.507059e+37 }
  0xc6   : > { %1447 = vrcp.f32 %v2118_v38  ;;  %v1340_v48 = vmul.f32 -1.442695, %v840_v40  ;;  %v945_v63 = vand.u32 2147483648, %v2118_v38  ;;  %v943_v14 = vand.u32 2147483647, %v2118_v38 }
  0xc7   : > { %v1442_v41 = vpop.eup %1441  ;;  %v824_v44 = vld [vmem:[#allocation2 + $0x40] sm:$0xff]  ;;  %800 = vst.msk [vmem:[#allocation2 + $0x30] sm:$0xff] %vm242_vm0, %v780_v9  ;;  %1449 = vpow2.f32 %v1342_v39  ;;  %v976_v1 = vor.u32 1.1754944e-38, %v975_v50  ;;  %vm939_vm8 = vweird.f32 %v2118_v38 }
  0xc8   : > { %v1444_v43 = vpop.eup %1443  ;;  %v2130_v36 = vadd.f32 1.0, %v1442_v41  ;;  %v847_v11 = vadd.f32 %v2093_v58, %v824_v44  ;;  %v710_v51 = vpop.xlane.xlu2 %709  ;;  %v946_v25 = vor.u32 1.1754944e-38, %v945_v63  ;;  %vm944_vm14 = vcmp.eq.f32.partialorder %v943_v14, 8.507059e+37 }
  0xc9   : > { %v995_v45 = vmul.f32 %v1444_v43, %v2103_v28  ;;  %v1446_v49 = vpop.eup %1445  ;;  %vm1000_vm5 = vweird.f32 %v1444_v43  ;;  %v785_v0 = vadd.f32 %v710_v51, %v273_v52 }
  0xca   : > { %1451 = vrcp.f32 %v2130_v36  ;;  %v965_v55 = vmul.f32 %v1446_v49, %v2108_v27  ;;  %v1347_v54 = vmul.f32 -1.442695, %v847_v11  ;;  %vm1001_vm6 = vmor %vm999_vm1, %vm1000_vm5  ;;  %vm970_vm7 = vweird.f32 %v1446_v49 }
  0xcb   : > { %v996_v12 = vsub.f32 1.0, %v995_v45  ;;  %1453 = vpow2.f32 %v1340_v48  ;;  %v823_v57 = vld [vmem:[#allocation2 + $0x38] sm:$0xff]  ;;  %805 = vst.msk [vmem:[#allocation2 + $0x58] sm:$0xff] %vm242_vm0, %v785_v0  ;;  %vm971_vm9 = vmor %vm969_vm3, %vm970_vm7  ;;  %v1018_v29 = vand.u32 2147483647, %v2130_v36  ;;  %v1020_v34 = vand.u32 2147483648, %v2130_v36 }
  0xcc   : > { %v846_v59 = vadd.f32 %v2093_v58, %v823_v57  ;;  %v701_v60 = vpop.xlane.xlu1 %700  ;;  %v1448_v61 = vpop.eup %1447  ;;  %v966_v62 = vsub.f32 1.0, %v965_v55  ;;  %1455 = vpow2.f32 %v1347_v54  ;;  %vm1014_vm12 = vweird.f32 %v2130_v36  ;;  %v271_v54 = vld [vmem:[#allocation2 + $0x48] sm:$0xff]  ;;  %v276_v0 = vld [vmem:[#allocation2 + $0x70] sm:$0xff] }
  0xcd   : > { %v997_v46 = vmul.f32 %v1444_v43, %v996_v12  ;;  %v784_v2 = vadd.f32 %v701_v60, %v272_v53  ;;  %v1450_v3 = vpop.eup %1449  ;;  %v935_v5 = vmul.f32 %v1448_v61, %v2118_v38  ;;  %vm940_vm10 = vweird.f32 %v1448_v61 }
  0xce   : > { %v967_v13 = vmul.f32 %v1446_v49, %v966_v62  ;;  %v2159_v15 = vadd.f32 1.0, %v1450_v3  ;;  %v1346_v19 = vmul.f32 -1.442695, %v846_v59  ;;  %v822_v20 = vld [vmem:[#allocation2 + $0x30] sm:$0xff]  ;;  %vm941_vm11 = vmor %vm939_vm8, %vm940_vm10  ;;  %vm1019_vm1 = vcmp.eq.f32.partialorder %v1018_v29, 8.507059e+37 }
  0xcf   : > { %v998_v4 = vadd.f32 %v1444_v43, %v997_v46  ;;  %v936_v18 = vsub.f32 1.0, %v935_v5  ;;  %804 = vst.msk [vmem:[#allocation2 + $0x50] sm:$0xff] %vm242_vm0, %v784_v2  ;;  %v845_v32 = vadd.f32 %v2093_v58, %v822_v20  ;;  %v1021_v45 = vor.u32 1.1754944e-38, %v1020_v34 }
  0xd0   : > { %v1452_v16 = vpop.eup %1451  ;;  %v968_v24 = vadd.f32 %v1446_v49, %v967_v13  ;;  %1457 = vrcp.f32 %v2159_v15  ;;  %v2174_v30 = vpop.xlane.xlu0 %691  ;;  %v988_v39 = vand.u32 2147483647, %v2159_v15  ;;  %v990_v47 = vand.u32 2147483648, %v2159_v15  ;;  %v275_v13 = vld [vmem:[#allocation2 + $0x68] sm:$0xff] }
  0xd1   : > { %v1002_v17 = vsel %vm1001_vm6, %v1444_v43, %v998_v4  ;;  %v1454_v21 = vpop.eup %1453  ;;  %v1010_v26 = vmul.f32 %v1452_v16, %v2130_v36  ;;  %v937_v28 = vmul.f32 %v1448_v61, %v936_v18  ;;  %1459 = vpow2.f32 %v1346_v19  ;;  %v274_v19 = vld [vmem:[#allocation2 + $0x60] sm:$0xff] }
  0xd2   : > { %v1007_v22 = vsel %vm2133_vm2, %v1006_v23, %v1002_v17  ;;  %v972_v6 = vsel %vm971_vm9, %v1446_v49, %v968_v24  ;;  %v2176_v31 = vadd.f32 1.0, %v1454_v21  ;;  %v1456_v33 = vpop.eup %1455  ;;  %vm1015_vm13 = vweird.f32 %v1452_v16  ;;  %v827_v9 = vld [vmem:[#allocation2 + $0x58] sm:$0xff] }
  0xd3   : > { %1223 = vst.msk [vmem:[%s2153_s30 + $0x20] sm:$0xff] %vm242_vm0, %v1007_v22  ;;  %v1011_v7 = vsub.f32 1.0, %v1010_v26  ;;  %v977_v27 = vsel %vm2142_vm4, %v976_v1, %v972_v6  ;;  %v938_v8 = vadd.f32 %v1448_v61, %v937_v28  ;;  %v2189_v40 = vadd.f32 1.0, %v1456_v33  ;;  %v737_v41 = vpop.xlane.xlu2 %736  ;;  %vm1016_vm15 = vmor %vm1014_vm12, %vm1015_vm13 }
  0xd4   : > { %1221 = vst.msk [vmem:[%s2153_s30 + $0x10] sm:$0xff] %vm242_vm0, %v977_v27  ;;  %1461 = vrcp.f32 %v2176_v31  ;;  %v1345_v10 = vmul.f32 -1.442695, %v845_v32  ;;  %v850_v38 = vadd.f32 %v2093_v58, %v827_v9  ;;  %vm984_vm2 = vweird.f32 %v2159_v15 }
  0xd5   : > { %v1012_v35 = vmul.f32 %v1452_v16, %v1011_v7  ;;  %v942_v37 = vsel %vm941_vm11, %v1448_v61, %v938_v8  ;;  %1463 = vrcp.f32 %v2189_v40  ;;  %v958_v12 = vand.u32 2147483647, %v2176_v31 }
  0xd6   : > { %v947_v42 = vsel %vm944_vm14, %v946_v25, %v942_v37  ;;  %v1458_v44 = vpop.eup %1457  ;;  %v826_v48 = vld [vmem:[#allocation2 + $0x50] sm:$0xff]  ;;  %v960_v36 = vand.u32 2147483648, %v2176_v31  ;;  %1465 = vpow2.f32 %v1345_v10  ;;  %v1350_v52 = vmul.f32 -1.442695, %v850_v38  ;;  %v279_v25 = vld [vmem:[#allocation2 + $0x88] sm:$0xff] }
  0xd7   : > { %v1013_v43 = vadd.f32 %v1452_v16, %v1012_v35  ;;  %1219 = vst.msk [vmem:[%s2153_s30] sm:$0xff] %vm242_vm0, %v947_v42  ;;  %v980_v49 = vmul.f32 %v1458_v44, %v2159_v15  ;;  %v728_v23 = vpop.xlane.xlu1 %727  ;;  %v1460_v50 = vpop.eup %1459  ;;  %vm2206_vm3 = vcmp.eq.f32.partialorder %v988_v39, 8.507059e+37  ;;  %v849_v46 = vadd.f32 %v2093_v58, %v826_v48  ;;  %v278_v35 = vld [vmem:[#allocation2 + $0x80] sm:$0xff] }
  0xd8   : > { %v2210_v57 = vadd.f32 1.0, %v1460_v50  ;;  %v991_v59 = vor.u32 1.1754944e-38, %v990_v47  ;;  %vm954_vm4 = vweird.f32 %v2176_v31  ;;  %1467 = vpow2.f32 %v1350_v52 }
  0xd9   : > { %v1017_v11 = vsel %vm1016_vm15, %v1452_v16, %v1013_v43  ;;  %v981_v55 = vsub.f32 1.0, %v980_v49  ;;  %vm985_vm5 = vweird.f32 %v1458_v44  ;;  %vm2216_vm6 = vcmp.eq.f32.partialorder %v958_v12, 8.507059e+37 }
  0xda   : > { %v1022_v51 = vsel %vm1019_vm1, %v1021_v45, %v1017_v11  ;;  %v2202_v53 = vpop.eup %1461  ;;  %1469 = vrcp.f32 %v2210_v57  ;;  %v961_v4 = vor.u32 1.1754944e-38, %v960_v36  ;;  %v1349_v1 = vmul.f32 -1.442695, %v849_v46  ;;  %vm986_vm7 = vmor %vm984_vm2, %vm985_vm5  ;;  %v277_v11 = vld [vmem:[#allocation2 + $0x78] sm:$0xff] }
  0xdb   : > { %1224 = vst.msk [vmem:[%s2153_s30 + $0x28] sm:$0xff] %vm242_vm0, %v1022_v51  ;;  %v950_v60 = vmul.f32 %v2202_v53, %v2176_v31  ;;  %v719_v61 = vpop.xlane.xlu0 %718  ;;  %v982_v62 = vmul.f32 %v1458_v44, %v981_v55  ;;  %v2221_v2 = vpop.eup %1463  ;;  %v783_v5 = vadd.f32 %v2174_v30, %v271_v54  ;;  %v1063_v17 = vand.u32 2147483647, %v2189_v40 }
  0xdc   : > { %v1055_v16 = vmul.f32 %v2221_v2, %v2189_v40  ;;  %v1065_v18 = vand.u32 2147483648, %v2189_v40  ;;  %v1466_v20 = vpop.eup %1465  ;;  %vm955_vm8 = vweird.f32 %v2202_v53  ;;  %1471 = vpow2.f32 %v1349_v1 }
  0xdd   : > { %v951_v3 = vsub.f32 1.0, %v950_v60  ;;  %v983_v14 = vadd.f32 %v1458_v44, %v982_v62  ;;  %803 = vst.msk [vmem:[#allocation2 + $0x48] sm:$0xff] %vm242_vm0, %v783_v5  ;;  %v788_v22 = vadd.f32 %v737_v41, %v276_v0  ;;  %v2234_v29 = vadd.f32 1.0, %v1466_v20  ;;  %vm956_vm10 = vmor %vm954_vm4, %vm955_vm8 }
  0xde   : > { %v1056_v28 = vsub.f32 1.0, %v1055_v16  ;;  %v787_v30 = vadd.f32 %v728_v23, %v275_v13  ;;  %v1468_v6 = vpop.eup %1467  ;;  %vm1059_vm9 = vweird.f32 %v2189_v40  ;;  %v786_v32 = vadd.f32 %v719_v61, %v274_v19 }
  0xdf   : > { %v952_v21 = vmul.f32 %v2202_v53, %v951_v3  ;;  %v764_v24 = vpop.xlane.xlu2 %763  ;;  %v987_v26 = vsel %vm986_vm7, %v1458_v44, %v983_v14  ;;  %808 = vst.msk [vmem:[#allocation2 + $0x70] sm:$0xff] %vm242_vm0, %v788_v22  ;;  %vm1060_vm11 = vweird.f32 %v2221_v2  ;;  %1473 = vrcp.f32 %v2234_v29 }
  0xe0   : > { %v992_v15 = vsel %vm2206_vm3, %v991_v59, %v987_v26  ;;  %v2241_v33 = vpop.eup %1469  ;;  %v1057_v27 = vmul.f32 %v2221_v2, %v1056_v28  ;;  %v791_v8 = vadd.f32 %v764_v24, %v279_v25  ;;  %vm2253_vm12 = vcmp.eq.f32.partialorder %v1063_v17, 8.507059e+37  ;;  %807 = vst.msk [vmem:[#allocation2 + $0x68] sm:$0xff] %vm242_vm0, %v787_v30  ;;  %vm1061_vm13 = vmor %vm1059_vm9, %vm1060_vm11  ;;  %v280_v17 = vld [vmem:[#allocation2 + $0x90] sm:$0xff] }
  0xe1   : > { %v953_v7 = vadd.f32 %v2202_v53, %v952_v21  ;;  %1222 = vst.msk [vmem:[%s2153_s30 + $0x18] sm:$0xff] %vm242_vm0, %v992_v15  ;;  %v1066_v9 = vor.u32 1.1754944e-38, %v1065_v18  ;;  %v1040_v31 = vmul.f32 %v2241_v33, %v2210_v57  ;;  %v1048_v43 = vand.u32 2147483647, %v2210_v57 }
  0xe2   : > { %v755_v34 = vpop.xlane.xlu1 %754  ;;  %v1058_v42 = vadd.f32 %v2221_v2, %v1057_v27  ;;  %v2264_v10 = vadd.f32 1.0, %v1468_v6  ;;  %806 = vst.msk [vmem:[#allocation2 + $0x60] sm:$0xff] %vm242_vm0, %v786_v32  ;;  %v1472_v38 = vpop.eup %1471  ;;  %vm1044_vm14 = vweird.f32 %v2210_v57  ;;  %v1050_v45 = vand.u32 2147483648, %v2210_v57 }
  0xe3   : > { %v957_v37 = vsel %vm956_vm10, %v2202_v53, %v953_v7  ;;  %v1041_v44 = vsub.f32 1.0, %v1040_v31  ;;  %v790_v47 = vadd.f32 %v755_v34, %v278_v35  ;;  %v1033_v12 = vand.u32 2147483647, %v2234_v29  ;;  %811 = vst.msk [vmem:[#allocation2 + $0x88] sm:$0xff] %vm242_vm0, %v791_v8 }
  0xe4   : > { %v962_v41 = vsel %vm2216_vm6, %v961_v4, %v957_v37  ;;  %v1062_v49 = vsel %vm1061_vm13, %v2221_v2, %v1058_v42  ;;  %v1035_v23 = vand.u32 2147483648, %v2234_v29  ;;  %1475 = vrcp.f32 %v2264_v10  ;;  %v825_v50 = vld [vmem:[#allocation2 + $0x48] sm:$0xff] }
  0xe5   : > { %1220 = vst.msk [vmem:[%s2153_s30 + $0x8] sm:$0xff] %vm242_vm0, %v962_v41  ;;  %v1067_v40 = vsel %vm2253_vm12, %v1066_v9, %v1062_v49  ;;  %v1042_v51 = vmul.f32 %v2241_v33, %v1041_v44  ;;  %vm1045_vm15 = vweird.f32 %v2241_v33  ;;  %v2284_v36 = vadd.f32 1.0, %v1472_v38  ;;  %v1474_v52 = vpop.eup %1473 }
  0xe6   : > { %v746_v48 = vpop.xlane.xlu0 %745  ;;  %810 = vst.msk [vmem:[#allocation2 + $0x80] sm:$0xff] %vm242_vm0, %v790_v47  ;;  %vm2289_vm1 = vcmp.eq.f32.partialorder %v1048_v43, 8.507059e+37  ;;  %v848_v55 = vadd.f32 %v2093_v58, %v825_v50  ;;  %v830_v56 = vld [vmem:[#allocation2 + $0x70] sm:$0xff]  ;;  %v1051_v59 = vor.u32 1.1754944e-38, %v1050_v45  ;;  %v1025_v60 = vmul.f32 %v1474_v52, %v2234_v29  ;;  %vm1046_vm3 = vmor %vm1044_vm14, %vm1045_vm15 }
  0xe7   : > { %1227 = vst.msk [vmem:[%s2153_s30 + $0x40] sm:$0xff] %vm242_vm0, %v1067_v40  ;;  %v789_v46 = vadd.f32 %v746_v48, %v277_v11  ;;  %v1043_v54 = vadd.f32 %v2241_v33, %v1042_v51  ;;  %vm1029_vm2 = vweird.f32 %v2234_v29  ;;  %vm2299_vm4 = vcmp.eq.f32.partialorder %v1033_v12, 8.507059e+37  ;;  %v829_v0 = vld [vmem:[#allocation2 + $0x68] sm:$0xff] }
  0xe8   : > { %v1036_v62 = vor.u32 1.1754944e-38, %v1035_v23  ;;  %v1108_v63 = vand.u32 2147483647, %v2264_v10  ;;  %1477 = vrcp.f32 %v2284_v36  ;;  %v1026_v3 = vsub.f32 1.0, %v1025_v60 }
  0xe9   : > { %809 = vst.msk [vmem:[#allocation2 + $0x78] sm:$0xff] %vm242_vm0, %v789_v46  ;;  %v1047_v2 = vsel %vm1046_vm3, %v2241_v33, %v1043_v54  ;;  %v1348_v4 = vmul.f32 -1.442695, %v848_v55  ;;  %v853_v57 = vadd.f32 %v2093_v58, %v830_v56  ;;  %v828_v1 = vld [vmem:[#allocation2 + $0x60] sm:$0xff]  ;;  %vm1104_vm5 = vweird.f32 %v2264_v10 }
  0xea   : > { %v1476_v5 = vpop.eup %1475  ;;  %v1052_v13 = vsel %vm2289_vm1, %v1051_v59, %v1047_v2  ;;  %v1110_v14 = vand.u32 2147483648, %v2264_v10  ;;  %v852_v16 = vadd.f32 %v2093_v58, %v829_v0  ;;  %v1027_v18 = vmul.f32 %v1474_v52, %v1026_v3  ;;  %v833_v20 = vld [vmem:[#allocation2 + $0x88] sm:$0xff] }
  0xeb   : > { %1226 = vst.msk [vmem:[%s2153_s30 + $0x38] sm:$0xff] %vm242_vm0, %v1052_v13  ;;  %vm1030_vm6 = vweird.f32 %v1474_v52  ;;  %v1100_v19 = vmul.f32 %v1476_v5, %v2264_v10  ;;  %1479 = vpow2.f32 %v1348_v4  ;;  %v1353_v22 = vmul.f32 -1.442695, %v853_v57 }
  0xec   : > { %v1352_v24 = vmul.f32 -1.442695, %v852_v16  ;;  %v851_v25 = vadd.f32 %v2093_v58, %v828_v1  ;;  %v856_v26 = vadd.f32 %v2093_v58, %v833_v20  ;;  %v1028_v30 = vadd.f32 %v1474_v52, %v1027_v18  ;;  %vm1031_vm8 = vmor %vm1029_vm2, %vm1030_vm6 }
  0xed   : > { %v832_v28 = vld [vmem:[#allocation2 + $0x80] sm:$0xff]  ;;  %v1101_v6 = vsub.f32 1.0, %v1100_v19  ;;  %vm2318_vm7 = vcmp.eq.f32.partialorder %v1108_v63, 8.507059e+37  ;;  %1481 = vpow2.f32 %v1353_v22  ;;  %vm1105_vm9 = vweird.f32 %v1476_v5 }
  0xee   : > { %v773_v21 = vpop.xlane.xlu0 %772  ;;  %v1478_v32 = vpop.eup %1477  ;;  %v1351_v33 = vmul.f32 -1.442695, %v851_v25  ;;  %v1356_v27 = vmul.f32 -1.442695, %v856_v26  ;;  %v855_v8 = vadd.f32 %v2093_v58, %v832_v28  ;;  %v1032_v34 = vsel %vm1031_vm8, %v1474_v52, %v1028_v30  ;;  %vm1106_vm11 = vmor %vm1104_vm5, %vm1105_vm9 }
  0xef   : > { %v792_v7 = vadd.f32 %v773_v21, %v280_v17  ;;  %v1102_v35 = vmul.f32 %v1476_v5, %v1101_v6  ;;  %v1085_v37 = vmul.f32 %v1478_v32, %v2284_v36  ;;  %v1037_v9 = vsel %vm2299_vm4, %v1036_v62, %v1032_v34 }
  0xf0   : > { %v831_v39 = vld [vmem:[#allocation2 + $0x78] sm:$0xff]  ;;  %v1111_v31 = vor.u32 1.1754944e-38, %v1110_v14  ;;  %vm1089_vm10 = vweird.f32 %v2284_v36  ;;  %1483 = vpow2.f32 %v1352_v24  ;;  %1225 = vst.msk [vmem:[%s2153_s30 + $0x30] sm:$0xff] %vm242_vm0, %v1037_v9  ;;  %v1095_v38 = vand.u32 2147483648, %v2284_v36 }
  0xf1   : > { %812 = vst.msk [vmem:[#allocation2 + $0x90] sm:$0xff] %vm242_vm0, %v792_v7  ;;  %v1480_v29 = vpop.eup %1479  ;;  %v1103_v41 = vadd.f32 %v1476_v5, %v1102_v35  ;;  %v1086_v42 = vsub.f32 1.0, %v1085_v37  ;;  %1485 = vpow2.f32 %v1351_v33  ;;  %v854_v43 = vadd.f32 %v2093_v58, %v831_v39 }
  0xf2   : > { %v2337_v44 = vadd.f32 1.0, %v1480_v29  ;;  %1487 = vpow2.f32 %v1356_v27  ;;  %v1355_v45 = vmul.f32 -1.442695, %v855_v8  ;;  %vm1090_vm12 = vweird.f32 %v1478_v32 }
  0xf3   : > { %v1107_v47 = vsel %vm1106_vm11, %v1476_v5, %v1103_v41  ;;  %v1087_v48 = vmul.f32 %v1478_v32, %v1086_v42  ;;  %v1093_v11 = vand.u32 2147483647, %v2284_v36  ;;  %v1482_v49 = vpop.eup %1481  ;;  %v1354_v50 = vmul.f32 -1.442695, %v854_v43  ;;  %vm1091_vm13 = vmor %vm1089_vm10, %vm1090_vm12 }
  0xf4   : > { %v1112_v12 = vsel %vm2318_vm7, %v1111_v31, %v1107_v47  ;;  %1489 = vrcp.f32 %v2337_v44  ;;  %v2345_v23 = vadd.f32 1.0, %v1482_v49  ;;  %v1096_v51 = vor.u32 1.1754944e-38, %v1095_v38 }
  0xf5   : > { %1230 = vst.msk [vmem:[%s2153_s30 + $0x58] sm:$0xff] %vm242_vm0, %v1112_v12  ;;  %v1088_v10 = vadd.f32 %v1478_v32, %v1087_v48  ;;  %1491 = vpow2.f32 %v1355_v45  ;;  %vm1094_vm14 = vcmp.eq.f32.partialorder %v1093_v11, 8.507059e+37  ;;  %v1078_v46 = vand.u32 2147483647, %v2337_v44 }
  0xf6   : > { %v1484_v40 = vpop.eup %1483  ;;  %1493 = vrcp.f32 %v2345_v23  ;;  %v1080_v59 = vand.u32 2147483648, %v2337_v44  ;;  %v1153_v62 = vand.u32 2147483647, %v2345_v23  ;;  %v1155_v0 = vand.u32 2147483648, %v2345_v23 }
  0xf7   : > { %v1486_v52 = vpop.eup %1485  ;;  %v1092_v53 = vsel %vm1091_vm13, %v1478_v32, %v1088_v10  ;;  %v2351_v54 = vadd.f32 1.0, %v1484_v40  ;;  %1495 = vpow2.f32 %v1354_v50  ;;  %vm1074_vm15 = vweird.f32 %v2337_v44 }
  0xf8   : > { %v1488_v55 = vpop.eup %1487  ;;  %v1097_v56 = vsel %vm1094_vm14, %v1096_v51, %v1092_v53  ;;  %v2356_v60 = vadd.f32 1.0, %v1486_v52  ;;  %v834_v2 = vld [vmem:[#allocation2 + $0x90] sm:$0xff]  ;;  %vm2365_vm1 = vcmp.eq.f32.partialorder %v1078_v46, 8.507059e+37  ;;  %v1081_v5 = vor.u32 1.1754944e-38, %v1080_v59 }
  0xf9   : > { %1229 = vst.msk [vmem:[%s2153_s30 + $0x50] sm:$0xff] %vm242_vm0, %v1097_v56  ;;  %v2358_v36 = vadd.f32 1.0, %v1488_v55  ;;  %1497 = vrcp.f32 %v2351_v54  ;;  %v1138_v13 = vand.u32 2147483647, %v2351_v54  ;;  %vm1149_vm2 = vweird.f32 %v2345_v23 }
  0xfa   : > { %v1490_v61 = vpop.eup %1489  ;;  %1499 = vrcp.f32 %v2356_v60  ;;  %vm2374_vm3 = vcmp.eq.f32.partialorder %v1153_v62, 8.507059e+37  ;;  %v857_v17 = vadd.f32 %v2093_v58, %v834_v2  ;;  %v1156_v20 = vor.u32 1.1754944e-38, %v1155_v0 }
  0xfb   : > { %v1070_v63 = vmul.f32 %v1490_v61, %v2337_v44  ;;  %v1492_v3 = vpop.eup %1491  ;;  %1501 = vrcp.f32 %v2358_v36  ;;  %vm1075_vm4 = vweird.f32 %v1490_v61  ;;  %v1140_v21 = vand.u32 2147483648, %v2351_v54 }
  0xfc   : > { %v1494_v57 = vpop.eup %1493  ;;  %vm1134_vm5 = vweird.f32 %v2351_v54  ;;  %v1123_v25 = vand.u32 2147483647, %v2356_v60  ;;  %v2382_v26 = vadd.f32 1.0, %v1492_v3  ;;  %vm2385_vm6 = vcmp.eq.f32.partialorder %v1138_v13, 8.507059e+37  ;;  %vm1076_vm8 = vmor %vm1074_vm15, %vm1075_vm4 }
  0xfd   : > { %v1071_v1 = vsub.f32 1.0, %v1070_v63  ;;  %v1145_v14 = vmul.f32 %v1494_v57, %v2345_v23  ;;  %v1496_v18 = vpop.eup %1495  ;;  %vm1119_vm7 = vweird.f32 %v2356_v60  ;;  %v1125_v58 = vand.u32 2147483648, %v2356_v60 }
  0xfe   : > { %vm1150_vm9 = vweird.f32 %v1494_v57  ;;  %1503 = vrcp.f32 %v2382_v26  ;;  %v2394_v32 = vadd.f32 1.0, %v1496_v18  ;;  %v1141_v34 = vor.u32 1.1754944e-38, %v1140_v21 }
  0xff   : > { %v1072_v19 = vmul.f32 %v1490_v61, %v1071_v1  ;;  %v1498_v22 = vpop.eup %1497  ;;  %v1146_v24 = vsub.f32 1.0, %v1145_v14  ;;  %v1198_v31 = vand.u32 2147483647, %v2358_v36  ;;  %vm1151_vm10 = vmor %vm1149_vm2, %vm1150_vm9  ;;  %v1200_v42 = vand.u32 2147483648, %v2358_v36 }
 0x100   : > { %v1130_v30 = vmul.f32 %v1498_v22, %v2351_v54  ;;  %v1500_v15 = vpop.eup %1499  ;;  %vm1135_vm11 = vweird.f32 %v1498_v22  ;;  %1505 = vrcp.f32 %v2394_v32  ;;  %v1357_v44 = vmul.f32 -1.442695, %v857_v17 }
 0x101   : > { %v1073_v28 = vadd.f32 %v1490_v61, %v1072_v19  ;;  %v1147_v7 = vmul.f32 %v1494_v57, %v1146_v24  ;;  %v1502_v33 = vpop.eup %1501  ;;  %v1115_v35 = vmul.f32 %v1500_v15, %v2356_v60  ;;  %vm1120_vm12 = vweird.f32 %v1500_v15  ;;  %vm1136_vm13 = vmor %vm1134_vm5, %vm1135_vm11 }
 0x102   : > { %v1131_v8 = vsub.f32 1.0, %v1130_v30  ;;  %v1190_v9 = vmul.f32 %v1502_v33, %v2358_v36  ;;  %vm2413_vm14 = vcmp.eq.f32.partialorder %v1123_v25, 8.507059e+37  ;;  %vm1194_vm15 = vweird.f32 %v2358_v36  ;;  %vm1121_vm2 = vmor %vm1119_vm7, %vm1120_vm12 }
 0x103   : > { %v1077_v27 = vsel %vm1076_vm8, %v1490_v61, %v1073_v28  ;;  %v1148_v39 = vadd.f32 %v1494_v57, %v1147_v7  ;;  %v1116_v41 = vsub.f32 1.0, %v1115_v35  ;;  %v1126_v50 = vor.u32 1.1754944e-38, %v1125_v58 }
 0x104   : > { %v1082_v37 = vsel %vm2365_vm1, %v1081_v5, %v1077_v27  ;;  %v1132_v29 = vmul.f32 %v1498_v22, %v1131_v8  ;;  %v1191_v38 = vsub.f32 1.0, %v1190_v9  ;;  %v1504_v11 = vpop.eup %1503  ;;  %vm1195_vm1 = vweird.f32 %v1502_v33 }
 0x105   : > { %1228 = vst.msk [vmem:[%s2153_s30 + $0x48] sm:$0xff] %vm242_vm0, %v1082_v37  ;;  %v1152_v43 = vsel %vm1151_vm10, %v1494_v57, %v1148_v39  ;;  %v1117_v48 = vmul.f32 %v1500_v15, %v1116_v41  ;;  %v1175_v40 = vmul.f32 %v1504_v11, %v2382_v26  ;;  %v1201_v53 = vor.u32 1.1754944e-38, %v1200_v42  ;;  %vm1196_vm4 = vmor %vm1194_vm15, %vm1195_vm1 }
 0x106   : > { %v1157_v45 = vsel %vm2374_vm3, %v1156_v20, %v1152_v43  ;;  %v1133_v47 = vadd.f32 %v1498_v22, %v1132_v29  ;;  %v1192_v12 = vmul.f32 %v1502_v33, %v1191_v38  ;;  %vm1199_vm3 = vcmp.eq.f32.partialorder %v1198_v31, 8.507059e+37  ;;  %v1506_v46 = vpop.eup %1505 }
 0x107   : > { %1233 = vst.msk [vmem:[%s2153_s30 + $0x70] sm:$0xff] %vm242_vm0, %v1157_v45  ;;  %v1118_v23 = vadd.f32 %v1500_v15, %v1117_v48  ;;  %v1176_v56 = vsub.f32 1.0, %v1175_v40  ;;  %vm1179_vm5 = vweird.f32 %v2382_v26  ;;  %1507 = vpow2.f32 %v1357_v44 }
 0x108   : > { %v1137_v10 = vsel %vm1136_vm13, %v1498_v22, %v1133_v47  ;;  %v1193_v52 = vadd.f32 %v1502_v33, %v1192_v12  ;;  %v1183_v60 = vand.u32 2147483647, %v2382_v26  ;;  %v1185_v36 = vand.u32 2147483648, %v2382_v26 }
 0x109   : > { %v1142_v51 = vsel %vm2385_vm6, %v1141_v34, %v1137_v10  ;;  %v1122_v55 = vsel %vm1121_vm2, %v1500_v15, %v1118_v23  ;;  %v1177_v62 = vmul.f32 %v1504_v11, %v1176_v56  ;;  %vm1180_vm6 = vweird.f32 %v1504_v11 }
 0x10a   : > { %1232 = vst.msk [vmem:[%s2153_s30 + $0x68] sm:$0xff] %vm242_vm0, %v1142_v51  ;;  %v1127_v54 = vsel %vm2413_vm14, %v1126_v50, %v1122_v55  ;;  %v1197_v59 = vsel %vm1196_vm4, %v1502_v33, %v1193_v52  ;;  %v1160_v63 = vmul.f32 %v1506_v46, %v2394_v32  ;;  %vm1181_vm7 = vmor %vm1179_vm5, %vm1180_vm6  ;;  %vm1184_vm8 = vcmp.eq.f32.partialorder %v1183_v60, 8.507059e+37 }
 0x10b   : > { %1231 = vst.msk [vmem:[%s2153_s30 + $0x60] sm:$0xff] %vm242_vm0, %v1127_v54  ;;  %v1202_v61 = vsel %vm1199_vm3, %v1201_v53, %v1197_v59  ;;  %v1178_v0 = vadd.f32 %v1504_v11, %v1177_v62  ;;  %v1186_v3 = vor.u32 1.1754944e-38, %v1185_v36  ;;  %v1170_v4 = vand.u32 2147483648, %v2394_v32 }
 0x10c   : > { %1236 = vst.msk [vmem:[%s2153_s30 + $0x88] sm:$0xff] %vm242_vm0, %v1202_v61  ;;  %v1161_v2 = vsub.f32 1.0, %v1160_v63  ;;  %vm1165_vm9 = vweird.f32 %v1506_v46  ;;  %v1168_v13 = vand.u32 2147483647, %v2394_v32  ;;  %vm1164_vm10 = vweird.f32 %v2394_v32 }
 0x10d   : > { %v1508_v57 = vpop.eup %1507  ;;  %v1182_v1 = vsel %vm1181_vm7, %v1504_v11, %v1178_v0  ;;  %vm1166_vm11 = vmor %vm1164_vm10, %vm1165_vm9  ;;  %v1171_v18 = vor.u32 1.1754944e-38, %v1170_v4 }
 0x10e   : > { %v1162_v5 = vmul.f32 %v1506_v46, %v1161_v2  ;;  %v1187_v14 = vsel %vm1184_vm8, %v1186_v3, %v1182_v1  ;;  %v933_v16 = vadd.f32 1.0, %v1508_v57  ;;  %vm1169_vm12 = vcmp.eq.f32.partialorder %v1168_v13, 8.507059e+37 }
 0x10f   : > { %1235 = vst.msk [vmem:[%s2153_s30 + $0x80] sm:$0xff] %vm242_vm0, %v1187_v14 }
 0x110   : > { %v1163_v17 = vadd.f32 %v1506_v46, %v1162_v5  ;;  %1509 = vrcp.f32 %v933_v16  ;;  %v1215_v25 = vand.u32 2147483648, %v933_v16  ;;  %v1213_v28 = vand.u32 2147483647, %v933_v16 }
 0x111   : > { %vm1209_vm14 = vweird.f32 %v933_v16 }
 0x112   : > { %v1167_v19 = vsel %vm1166_vm11, %v1506_v46, %v1163_v17  ;;  %v1216_v6 = vor.u32 1.1754944e-38, %v1215_v25  ;;  %vm1214_vm1 = vcmp.eq.f32.partialorder %v1213_v28, 8.507059e+37 }
 0x113   : > { %v1172_v20 = vsel %vm1169_vm12, %v1171_v18, %v1167_v19 }
 0x114   : > { %1234 = vst.msk [vmem:[%s2153_s30 + $0x78] sm:$0xff] %vm242_vm0, %v1172_v20 }
 0x116   : > { %v1510_v21 = vpop.eup %1509 }
 0x117   : > { %v1205_v22 = vmul.f32 %v1510_v21, %v933_v16  ;;  %vm1210_vm13 = vweird.f32 %v1510_v21 }
 0x118   : > { %vm1211_vm15 = vmor %vm1209_vm14, %vm1210_vm13 }
 0x119   : > { %v1206_v24 = vsub.f32 1.0, %v1205_v22 }
 0x11b   : > { %v1207_v26 = vmul.f32 %v1510_v21, %v1206_v24 }
 0x11d   : > { %v1208_v30 = vadd.f32 %v1510_v21, %v1207_v26 }
 0x11f   : > { %v1212_v58 = vsel %vm1211_vm15, %v1510_v21, %v1208_v30 }
 0x120   : > { %v1217_v15 = vsel %vm1214_vm1, %v1216_v6, %v1212_v58 }
 0x121   : > { %1237 = vst.msk [vmem:[%s2153_s30 + $0x90] sm:$0xff] %vm242_vm0, %v1217_v15 }
 0x122 PF: > { %s19_s19 = sadd.s32 1, %s1625_s19   ;;  %s2498_s14 = smov %s1609_s15 }
 0x123   : > { %p16_p2 = scmp.ge.s32.totalorder %s19_s19, 4   ;;  %s2499_s15 = smov %s1613_s16 }
 0x124   : > { %s2500_s16 = smov %s1735_s2  ;;  %s2501_s17 = smov %s1621_s18 }
 0x125   : > { %s2502_s18 = smov %s2504_s4  ;;  %18 = sbr.rel (!%p16_p2) target bundleno = 8 (0x8), region = 85 }
 0x12a   :  { %1260 = vsyncpa [#allocation5], 1 }
 0x12b   :  { %1262 = vsyncpa [#allocation5 + $0x1], 1 }
 0x12c   :  { %1263 = vsyncpa [#allocation7], 1 }

</bundles_post_ra>
